<compile_context>
chip_gen: v6e
topology: v6e:2x2x1
jax: 0.10.0
libtpu: 0.0.40
codegen_flags: <defaults>
</compile_context>

<pallas_src>
import functools

import jax
import jax.numpy as jnp
from jax.experimental import pallas as pl
from jax.experimental.pallas import tpu as pltpu

_LANE = 128       # lane width: pad channel dims to a multiple of this
_ROW_CHUNK = 8    # rows processed per in-kernel chunk


def _round_up(n, m=_LANE):
    return ((n + m - 1) // m) * m


def _pad_axis(a, target, axis):
    pad = target - a.shape[axis]
    if pad == 0:
        return a
    cfg = [(0, 0)] * a.ndim
    cfg[axis] = (0, pad)
    return jnp.pad(a, cfg)


def _fold_bn(gamma, beta, mean, var, eps=1e-5):
    """Fold eval-mode BatchNorm into a per-channel scale/bias."""
    scale = gamma / jnp.sqrt(var + eps)
    bias = beta - mean * scale
    return scale, bias


# ---------------------------------------------------------------------------
# Fused Block kernel
# ---------------------------------------------------------------------------
def _make_block_kernel(*, K, stride, H, W, Hout, Wout, has_sc_conv, identity_sc):
    p = K // 2
    TH = min(_ROW_CHUNK, H)        # expand-stage row chunk
    THo = min(_ROW_CHUNK, Hout)    # depthwise/project-stage output-row chunk

    def kernel(*refs):
        if has_sc_conv:
            (x_ref, w1_ref, s1_ref, b1_ref, w2_ref, s2_ref, b2_ref,
             w3_ref, s3_ref, b3_ref, wsc_ref, ssc_ref, bsc_ref,
             o_ref, ex_ref) = refs
        else:
            (x_ref, w1_ref, s1_ref, b1_ref, w2_ref, s2_ref, b2_ref,
             w3_ref, s3_ref, b3_ref, o_ref, ex_ref) = refs
            wsc_ref = ssc_ref = bsc_ref = None

        Ce = ex_ref.shape[-1]
        Cin_p = x_ref.shape[-1]
        Co_p = o_ref.shape[-1]

        # hoisted (1, C) folded-BN scale/bias loads, reused by every chunk
        s1 = s1_ref[...]
        b1 = b1_ref[...]
        s2 = s2_ref[...]
        b2 = b2_ref[...]
        s3 = s3_ref[...]
        b3 = b3_ref[...]

        # ------------------------------------------------------------------
        # 0) zero the halo border of the expanded-activation scratch.  The
        #    depthwise conv reads this border as its spatial zero padding
        #    (re-done every grid step: scratch is per-core with "parallel").
        # ------------------------------------------------------------------
        if p > 0:
            zrow = jnp.zeros((p, W + 2 * p, Ce), jnp.float32)
            ex_ref[0:p, :, :] = zrow
            ex_ref[H + p:H + 2 * p, :, :] = zrow
            zcol = jnp.zeros((H + 2 * p, p, Ce), jnp.float32)
            ex_ref[:, 0:p, :] = zcol
            ex_ref[:, W + p:W + 2 * p, :] = zcol

        # ------------------------------------------------------------------
        # 1) expand 1x1 conv + BN + ReLU  ->  VMEM scratch interior
        # ------------------------------------------------------------------
        for h0 in range(0, H, TH):
            th = min(TH, H - h0)
            xc = x_ref[0, h0:h0 + th, :, :].reshape(th * W, Cin_p)
            e = jnp.dot(xc, w1_ref[...], preferred_element_type=jnp.float32)
            e = jnp.maximum(e * s1 + b1, 0.0)
            ex_ref[p + h0:p + h0 + th, p:p + W, :] = e.reshape(th, W, Ce)

        # ------------------------------------------------------------------
        # 2) depthwise KxK + BN + ReLU, 3) project 1x1 + BN (+ shortcut),
        #    processed in output-row chunks straight out of the VMEM scratch.
        # ------------------------------------------------------------------
        for h0 in range(0, Hout, THo):
            th = min(THo, Hout - h0)
            acc = jnp.zeros((th, Wout, Ce), jnp.float32)
            for dh in range(K):
                for dw in range(K):
                    if stride == 1:
                        tap = ex_ref[h0 + dh:h0 + dh + th, dw:dw + Wout, :]
                    else:
                        # TODO(synk): stride>1 tap path is correct but less
                        # optimized (value-level W subsampling).
                        tap = ex_ref[pl.ds(h0 * stride + dh, th, stride=stride),
                                     dw:dw + stride * (Wout - 1) + 1, :]
                        tap = tap[:, ::stride, :]
                    acc = acc + tap * w2_ref[dh * K + dw, :]
            acc = jnp.maximum(acc * s2 + b2, 0.0)

            a2 = acc.reshape(th * Wout, Ce).astype(jnp.bfloat16)
            y = jnp.dot(a2, w3_ref[...], preferred_element_type=jnp.float32)
            y = y * s3 + b3

            if stride == 1:
                xc = x_ref[0, h0:h0 + th, :, :].reshape(th * W, Cin_p)
                if has_sc_conv:
                    r = jnp.dot(xc, wsc_ref[...],
                                preferred_element_type=jnp.float32)
                    y = y + (r * ssc_ref[...] + bsc_ref[...])
                elif identity_sc:
                    y = y + xc.astype(jnp.float32)

            o_ref[0, h0:h0 + th, :, :] = (
                y.reshape(th, Wout, Co_p).astype(o_ref.dtype))

    return kernel


# ---------------------------------------------------------------------------
# Block forward (wrapper / glue)
# ---------------------------------------------------------------------------
def block_forward(x_nchw, params, *, kernel_size, stride):
    """Forward pass of Block (eval-mode BN, nolinear == ReLU, se == None)."""
    N, Cin, H, W = x_nchw.shape
    K = kernel_size
    p = K // 2
    Hout = (H + 2 * p - K) // stride + 1
    Wout = (W + 2 * p - K) // stride + 1
    Cexp = params["w1"].shape[1]
    Cout = params["w3"].shape[1]
    Cin_p, Ce_p, Co_p = _round_up(Cin), _round_up(Cexp), _round_up(Cout)

    has_sc_conv = (stride == 1) and ("w_sc" in params)
    identity_sc = (stride == 1) and not has_sc_conv
    if identity_sc:
        assert Cin == Cout, "identity shortcut requires in_size == out_size"

    # --- pack operands: NHWC, channels padded to lane multiples, bf16 MXU inputs
    x = jnp.transpose(x_nchw, (0, 2, 3, 1))                     # NCHW -> NHWC
    x = _pad_axis(x, Cin_p, -1).astype(jnp.bfloat16)

    w1 = _pad_axis(_pad_axis(params["w1"], Cin_p, 0), Ce_p, 1).astype(jnp.bfloat16)
    s1, b1 = _fold_bn(*params["bn1"])
    s1 = _pad_axis(s1, Ce_p, -1).reshape(1, Ce_p)
    b1 = _pad_axis(b1, Ce_p, -1).reshape(1, Ce_p)

    w2 = _pad_axis(params["w2"].reshape(K * K, Cexp).astype(jnp.float32), Ce_p, -1)
    s2, b2 = _fold_bn(*params["bn2"])
    s2 = _pad_axis(s2, Ce_p, -1).reshape(1, Ce_p)
    b2 = _pad_axis(b2, Ce_p, -1).reshape(1, Ce_p)

    w3 = _pad_axis(_pad_axis(params["w3"], Ce_p, 0), Co_p, 1).astype(jnp.bfloat16)
    s3, b3 = _fold_bn(*params["bn3"])
    s3 = _pad_axis(s3, Co_p, -1).reshape(1, Co_p)
    b3 = _pad_axis(b3, Co_p, -1).reshape(1, Co_p)

    args = [x, w1, s1, b1, w2, s2, b2, w3, s3, b3]
    in_specs = [
        pl.BlockSpec((1, H, W, Cin_p), lambda n: (n, 0, 0, 0)),
        pl.BlockSpec((Cin_p, Ce_p), lambda n: (0, 0)),
        pl.BlockSpec((1, Ce_p), lambda n: (0, 0)),
        pl.BlockSpec((1, Ce_p), lambda n: (0, 0)),
        pl.BlockSpec((K * K, Ce_p), lambda n: (0, 0)),
        pl.BlockSpec((1, Ce_p), lambda n: (0, 0)),
        pl.BlockSpec((1, Ce_p), lambda n: (0, 0)),
        pl.BlockSpec((Ce_p, Co_p), lambda n: (0, 0)),
        pl.BlockSpec((1, Co_p), lambda n: (0, 0)),
        pl.BlockSpec((1, Co_p), lambda n: (0, 0)),
    ]
    if has_sc_conv:
        wsc = _pad_axis(_pad_axis(params["w_sc"], Cin_p, 0), Co_p, 1).astype(jnp.bfloat16)
        ssc, bsc = _fold_bn(*params["bn_sc"])
        ssc = _pad_axis(ssc, Co_p, -1).reshape(1, Co_p)
        bsc = _pad_axis(bsc, Co_p, -1).reshape(1, Co_p)
        args += [wsc, ssc, bsc]
        in_specs += [
            pl.BlockSpec((Cin_p, Co_p), lambda n: (0, 0)),
            pl.BlockSpec((1, Co_p), lambda n: (0, 0)),
            pl.BlockSpec((1, Co_p), lambda n: (0, 0)),
        ]

    kernel = _make_block_kernel(K=K, stride=stride, H=H, W=W, Hout=Hout,
                                Wout=Wout, has_sc_conv=has_sc_conv,
                                identity_sc=identity_sc)

    out = pl.pallas_call(
        kernel,
        out_shape=jax.ShapeDtypeStruct((N, Hout, Wout, Co_p), jnp.float32),
        grid=(N,),
        in_specs=in_specs,
        out_specs=pl.BlockSpec((1, Hout, Wout, Co_p), lambda n: (n, 0, 0, 0)),
        scratch_shapes=[pltpu.VMEM((H + 2 * p, W + 2 * p, Ce_p), jnp.float32)],
        compiler_params=pltpu.CompilerParams(
            dimension_semantics=("parallel",),
            vmem_limit_bytes=48 * 1024 * 1024),
    )(*args)

    out = out[:, :, :, :Cout]                                   # drop channel padding
    # TODO(synk): a multi-block network should stay NHWC end-to-end; the
    # NCHW<->NHWC transposes here only exist to match the PyTorch interface.
    return jnp.transpose(out, (0, 3, 1, 2))


# ---------------------------------------------------------------------------
# Pure-JAX reference (f32, with the same bf16 quantization of MXU operands)
# ---------------------------------------------------------------------------
def _reference_block(x_nchw, params, *, kernel_size, stride):
    q = lambda a: a.astype(jnp.bfloat16).astype(jnp.float32)
    K = kernel_size
    p = K // 2
    x = q(jnp.transpose(x_nchw, (0, 2, 3, 1)))

    def bn(t, prm):
        g, b, m, v = prm
        return (t - m) / jnp.sqrt(v + 1e-5) * g + b

    e = jnp.einsum("nhwc,ce->nhwe", x, q(params["w1"]))
    e = jax.nn.relu(bn(e, params["bn1"]))
    ep = jnp.pad(e, ((0, 0), (p, p), (p, p), (0, 0)))
    N, H, W, _ = x.shape
    Hout = (H + 2 * p - K) // stride + 1
    Wout = (W + 2 * p - K) // stride + 1
    w2 = params["w2"]
    acc = jnp.zeros((N, Hout, Wout, e.shape[-1]), jnp.float32)
    for dh in range(K):
        for dw in range(K):
            acc = acc + ep[:, dh:dh + stride * (Hout - 1) + 1:stride,
                              dw:dw + stride * (Wout - 1) + 1:stride, :] * w2[dh, dw, :]
    d = jax.nn.relu(bn(acc, params["bn2"]))
    o = bn(jnp.einsum("nhwe,eo->nhwo", d, q(params["w3"])), params["bn3"])
    if stride == 1:
        if "w_sc" in params:
            r = bn(jnp.einsum("nhwc,co->nhwo", x, q(params["w_sc"])), params["bn_sc"])
        else:
            r = x
        o = o + r
    return jnp.transpose(o, (0, 3, 1, 2))


# ---------------------------------------------------------------------------
# Demo
# ---------------------------------------------------------------------------
if __name__ == "__main__":
    N, Cin, H, W = 2, 4, 16, 16
    Cexp, Cout, K, stride = 8, 8, 3, 1
    Hout = (H + 2 * (K // 2) - K) // stride + 1
    Wout = (W + 2 * (K // 2) - K) // stride + 1

    key = jax.random.PRNGKey(0)
    keys = jax.random.split(key, 12)

    def bn_params(k, c):
        k1, k2, k3, k4 = jax.random.split(k, 4)
        gamma = jax.random.uniform(k1, (c,), minval=0.5, maxval=1.5)
        beta = jax.random.normal(k2, (c,)) * 0.1
        mean = jax.random.normal(k3, (c,)) * 0.1
        var = jax.random.uniform(k4, (c,), minval=0.5, maxval=1.5)
        return (gamma, beta, mean, var)

    # weights generated in the PyTorch layouts, converted to kernel layout
    w1_t = jax.random.normal(keys[0], (Cexp, Cin, 1, 1), jnp.float32) * 0.1   # conv1
    w2_t = jax.random.normal(keys[1], (Cexp, 1, K, K), jnp.float32) * 0.1     # conv2 (dw)
    w3_t = jax.random.normal(keys[2], (Cout, Cexp, 1, 1), jnp.float32) * 0.1  # conv3

    params = {
        "w1": jnp.transpose(w1_t[:, :, 0, 0], (1, 0)),      # (Cin, Cexp)
        "bn1": bn_params(keys[3], Cexp),
        "w2": jnp.transpose(w2_t[:, 0, :, :], (1, 2, 0)),    # (K, K, Cexp)
        "bn2": bn_params(keys[4], Cexp),
        "w3": jnp.transpose(w3_t[:, :, 0, 0], (1, 0)),       # (Cexp, Cout)
        "bn3": bn_params(keys[5], Cout),
    }
    if stride == 1 and Cin != Cout:
        wsc_t = jax.random.normal(keys[6], (Cout, Cin, 1, 1), jnp.float32) * 0.1
        params["w_sc"] = jnp.transpose(wsc_t[:, :, 0, 0], (1, 0))   # (Cin, Cout)
        params["bn_sc"] = bn_params(keys[7], Cout)

    x = jax.random.normal(keys[8], (N, Cin, H, W), jnp.float32)

    fwd = jax.jit(functools.partial(block_forward, kernel_size=K, stride=stride))
    y = fwd(x, params)
    jax.block_until_ready(y)

    assert y.shape == (N, Cout, Hout, Wout)
    y_ref = _reference_block(x, params, kernel_size=K, stride=stride)
    err = float(jnp.max(jnp.abs(y - y_ref)))
    assert err < 3e-2, f"mismatch vs reference: max abs err = {err}"
    print("KERNEL_OK")
</pallas_src>

<mosaic_0001>
module attributes {stable_mosaic.version = 11 : i64} {
  func.func @kernel(%arg0: i32, %arg1: memref<1x16x16x128xbf16, #tpu.memory_space<vmem>>, %arg2: memref<128x128xbf16, #tpu.memory_space<vmem>>, %arg3: memref<1x128xf32, #tpu.memory_space<vmem>>, %arg4: memref<1x128xf32, #tpu.memory_space<vmem>>, %arg5: memref<9x128xf32, #tpu.memory_space<vmem>>, %arg6: memref<1x128xf32, #tpu.memory_space<vmem>>, %arg7: memref<1x128xf32, #tpu.memory_space<vmem>>, %arg8: memref<128x128xbf16, #tpu.memory_space<vmem>>, %arg9: memref<1x128xf32, #tpu.memory_space<vmem>>, %arg10: memref<1x128xf32, #tpu.memory_space<vmem>>, %arg11: memref<128x128xbf16, #tpu.memory_space<vmem>>, %arg12: memref<1x128xf32, #tpu.memory_space<vmem>>, %arg13: memref<1x128xf32, #tpu.memory_space<vmem>>, %arg14: memref<1x16x16x128xf32, #tpu.memory_space<vmem>>, %arg15: memref<18x18x128xf32, #tpu.memory_space<vmem>>) attributes {dimension_semantics = [#tpu.dimension_semantics<parallel>], iteration_bounds = array<i64: 2>, scalar_prefetch = 0 : i64, scratch_operands = 1 : i64, tpu.core_type = #tpu.core_type<tc>, window_params = [{transform_indices = @transform_0, window_bounds = array<i64: 1, 16, 16, 128>}, {pipeline_mode = #tpu.pipeline_mode<synchronous>, transform_indices = @transform_1, window_bounds = array<i64: 128, 128>}, {pipeline_mode = #tpu.pipeline_mode<synchronous>, transform_indices = @transform_2, window_bounds = array<i64: 1, 128>}, {pipeline_mode = #tpu.pipeline_mode<synchronous>, transform_indices = @transform_3, window_bounds = array<i64: 1, 128>}, {pipeline_mode = #tpu.pipeline_mode<synchronous>, transform_indices = @transform_4, window_bounds = array<i64: 9, 128>}, {pipeline_mode = #tpu.pipeline_mode<synchronous>, transform_indices = @transform_5, window_bounds = array<i64: 1, 128>}, {pipeline_mode = #tpu.pipeline_mode<synchronous>, transform_indices = @transform_6, window_bounds = array<i64: 1, 128>}, {pipeline_mode = #tpu.pipeline_mode<synchronous>, transform_indices = @transform_7, window_bounds = array<i64: 128, 128>}, {pipeline_mode = #tpu.pipeline_mode<synchronous>, transform_indices = @transform_8, window_bounds = array<i64: 1, 128>}, {pipeline_mode = #tpu.pipeline_mode<synchronous>, transform_indices = @transform_9, window_bounds = array<i64: 1, 128>}, {pipeline_mode = #tpu.pipeline_mode<synchronous>, transform_indices = @transform_10, window_bounds = array<i64: 128, 128>}, {pipeline_mode = #tpu.pipeline_mode<synchronous>, transform_indices = @transform_11, window_bounds = array<i64: 1, 128>}, {pipeline_mode = #tpu.pipeline_mode<synchronous>, transform_indices = @transform_12, window_bounds = array<i64: 1, 128>}, {transform_indices = @transform_13, window_bounds = array<i64: 1, 16, 16, 128>}]} {
    %c0 = arith.constant 0 : index
    %c0_0 = arith.constant 0 : index
    %0 = vector.load %arg3[%c0, %c0_0] : memref<1x128xf32, #tpu.memory_space<vmem>>, vector<1x128xf32>
    %c0_1 = arith.constant 0 : index
    %c0_2 = arith.constant 0 : index
    %1 = vector.load %arg4[%c0_1, %c0_2] : memref<1x128xf32, #tpu.memory_space<vmem>>, vector<1x128xf32>
    %c0_3 = arith.constant 0 : index
    %c0_4 = arith.constant 0 : index
    %2 = vector.load %arg6[%c0_3, %c0_4] : memref<1x128xf32, #tpu.memory_space<vmem>>, vector<1x128xf32>
    %c0_5 = arith.constant 0 : index
    %c0_6 = arith.constant 0 : index
    %3 = vector.load %arg7[%c0_5, %c0_6] : memref<1x128xf32, #tpu.memory_space<vmem>>, vector<1x128xf32>
    %c0_7 = arith.constant 0 : index
    %c0_8 = arith.constant 0 : index
    %4 = vector.load %arg9[%c0_7, %c0_8] : memref<1x128xf32, #tpu.memory_space<vmem>>, vector<1x128xf32>
    %c0_9 = arith.constant 0 : index
    %c0_10 = arith.constant 0 : index
    %5 = vector.load %arg10[%c0_9, %c0_10] : memref<1x128xf32, #tpu.memory_space<vmem>>, vector<1x128xf32>
    %cst = arith.constant 0.000000e+00 : f32
    %6 = vector.broadcast %cst : f32 to vector<1x18x128xf32>
    %c0_11 = arith.constant 0 : index
    %c0_12 = arith.constant 0 : index
    %c0_13 = arith.constant 0 : index
    %7 = vector.load %arg15[%c0_11, %c0_12, %c0_13] : memref<18x18x128xf32, #tpu.memory_space<vmem>>, vector<1x18x128xf32>
    tpu.vector_store %arg15[%c0_11, %c0_12, %c0_13], %6 {strides = array<i32>} : memref<18x18x128xf32, #tpu.memory_space<vmem>>, vector<1x18x128xf32>,
    %c17 = arith.constant 17 : index
    %c0_14 = arith.constant 0 : index
    %c0_15 = arith.constant 0 : index
    %8 = vector.load %arg15[%c17, %c0_14, %c0_15] : memref<18x18x128xf32, #tpu.memory_space<vmem>>, vector<1x18x128xf32>
    tpu.vector_store %arg15[%c17, %c0_14, %c0_15], %6 {strides = array<i32>} : memref<18x18x128xf32, #tpu.memory_space<vmem>>, vector<1x18x128xf32>,
    %cst_16 = arith.constant 0.000000e+00 : f32
    %9 = vector.broadcast %cst_16 : f32 to vector<18x1x128xf32>
    %c0_17 = arith.constant 0 : index
    %c0_18 = arith.constant 0 : index
    %c0_19 = arith.constant 0 : index
    %10 = vector.load %arg15[%c0_17, %c0_18, %c0_19] : memref<18x18x128xf32, #tpu.memory_space<vmem>>, vector<18x1x128xf32>
    tpu.vector_store %arg15[%c0_17, %c0_18, %c0_19], %9 {strides = array<i32>} : memref<18x18x128xf32, #tpu.memory_space<vmem>>, vector<18x1x128xf32>,
    %c0_20 = arith.constant 0 : index
    %c17_21 = arith.constant 17 : index
    %c0_22 = arith.constant 0 : index
    %11 = vector.load %arg15[%c0_20, %c17_21, %c0_22] : memref<18x18x128xf32, #tpu.memory_space<vmem>>, vector<18x1x128xf32>
    tpu.vector_store %arg15[%c0_20, %c17_21, %c0_22], %9 {strides = array<i32>} : memref<18x18x128xf32, #tpu.memory_space<vmem>>, vector<18x1x128xf32>,
    %c0_23 = arith.constant 0 : index
    %c0_24 = arith.constant 0 : index
    %c0_25 = arith.constant 0 : index
    %c0_26 = arith.constant 0 : index
    %12 = vector.load %arg1[%c0_23, %c0_24, %c0_25, %c0_26] : memref<1x16x16x128xbf16, #tpu.memory_space<vmem>>, vector<1x8x16x128xbf16>
    %13 = vector.shape_cast %12 : vector<1x8x16x128xbf16> to vector<8x16x128xbf16>
    %14 = vector.shape_cast %13 : vector<8x16x128xbf16> to vector<128x128xbf16>
    %c0_27 = arith.constant 0 : index
    %c0_28 = arith.constant 0 : index
    %15 = vector.load %arg2[%c0_27, %c0_28] : memref<128x128xbf16, #tpu.memory_space<vmem>>, vector<128x128xbf16>
    %cst_29 = arith.constant dense<0.000000e+00> : vector<128x128xf32>
    %16 = tpu.matmul %14, %15, %cst_29 {dimension_numbers = #tpu.dot_dimension_numbers<[1], [0], [0], [1], [0, 0, 1, 1], [], []>} : vector<128x128xbf16>, vector<128x128xbf16>, vector<128x128xf32> -> vector<128x128xf32>
    %17 = vector.broadcast %0 : vector<1x128xf32> to vector<128x128xf32>
    %18 = arith.mulf %16, %17 : vector<128x128xf32>
    %19 = vector.broadcast %1 : vector<1x128xf32> to vector<128x128xf32>
    %20 = arith.addf %18, %19 : vector<128x128xf32>
    %cst_30 = arith.constant 0.000000e+00 : f32
    %21 = vector.broadcast %cst_30 : f32 to vector<128x128xf32>
    %22 = arith.maximumf %20, %21 : vector<128x128xf32>
    %23 = vector.shape_cast %22 : vector<128x128xf32> to vector<8x16x128xf32>
    %c1 = arith.constant 1 : index
    %c1_31 = arith.constant 1 : index
    %c0_32 = arith.constant 0 : index
    %24 = vector.load %arg15[%c1, %c1_31, %c0_32] : memref<18x18x128xf32, #tpu.memory_space<vmem>>, vector<8x16x128xf32>
    tpu.vector_store %arg15[%c1, %c1_31, %c0_32], %23 {strides = array<i32>} : memref<18x18x128xf32, #tpu.memory_space<vmem>>, vector<8x16x128xf32>,
    %c0_33 = arith.constant 0 : index
    %c8 = arith.constant 8 : index
    %c0_34 = arith.constant 0 : index
    %c0_35 = arith.constant 0 : index
    %25 = vector.load %arg1[%c0_33, %c8, %c0_34, %c0_35] : memref<1x16x16x128xbf16, #tpu.memory_space<vmem>>, vector<1x8x16x128xbf16>
    %26 = vector.shape_cast %25 : vector<1x8x16x128xbf16> to vector<8x16x128xbf16>
    %27 = vector.shape_cast %26 : vector<8x16x128xbf16> to vector<128x128xbf16>
    %c0_36 = arith.constant 0 : index
    %c0_37 = arith.constant 0 : index
    %28 = vector.load %arg2[%c0_36, %c0_37] : memref<128x128xbf16, #tpu.memory_space<vmem>>, vector<128x128xbf16>
    %cst_38 = arith.constant dense<0.000000e+00> : vector<128x128xf32>
    %29 = tpu.matmul %27, %28, %cst_38 {dimension_numbers = #tpu.dot_dimension_numbers<[1], [0], [0], [1], [0, 0, 1, 1], [], []>} : vector<128x128xbf16>, vector<128x128xbf16>, vector<128x128xf32> -> vector<128x128xf32>
    %30 = vector.broadcast %0 : vector<1x128xf32> to vector<128x128xf32>
    %31 = arith.mulf %29, %30 : vector<128x128xf32>
    %32 = vector.broadcast %1 : vector<1x128xf32> to vector<128x128xf32>
    %33 = arith.addf %31, %32 : vector<128x128xf32>
    %cst_39 = arith.constant 0.000000e+00 : f32
    %34 = vector.broadcast %cst_39 : f32 to vector<128x128xf32>
    %35 = arith.maximumf %33, %34 : vector<128x128xf32>
    %36 = vector.shape_cast %35 : vector<128x128xf32> to vector<8x16x128xf32>
    %c9 = arith.constant 9 : index
    %c1_40 = arith.constant 1 : index
    %c0_41 = arith.constant 0 : index
    %37 = vector.load %arg15[%c9, %c1_40, %c0_41] : memref<18x18x128xf32, #tpu.memory_space<vmem>>, vector<8x16x128xf32>
    tpu.vector_store %arg15[%c9, %c1_40, %c0_41], %36 {strides = array<i32>} : memref<18x18x128xf32, #tpu.memory_space<vmem>>, vector<8x16x128xf32>,
    %cst_42 = arith.constant 0.000000e+00 : f32
    %38 = vector.broadcast %cst_42 : f32 to vector<8x16x128xf32>
    %c0_43 = arith.constant 0 : index
    %c0_44 = arith.constant 0 : index
    %c0_45 = arith.constant 0 : index
    %39 = vector.load %arg15[%c0_43, %c0_44, %c0_45] : memref<18x18x128xf32, #tpu.memory_space<vmem>>, vector<8x16x128xf32>
    %c0_46 = arith.constant 0 : index
    %c0_47 = arith.constant 0 : index
    %40 = vector.load %arg5[%c0_46, %c0_47] : memref<9x128xf32, #tpu.memory_space<vmem>>, vector<1x128xf32>
    %41 = vector.shape_cast %40 : vector<1x128xf32> to vector<128xf32>
    %42 = vector.shape_cast %41 : vector<128xf32> to vector<1x1x128xf32>
    %43 = vector.broadcast %42 : vector<1x1x128xf32> to vector<8x16x128xf32>
    %44 = arith.mulf %39, %43 : vector<8x16x128xf32>
    %45 = arith.addf %38, %44 : vector<8x16x128xf32>
    %c0_48 = arith.constant 0 : index
    %c1_49 = arith.constant 1 : index
    %c0_50 = arith.constant 0 : index
    %46 = vector.load %arg15[%c0_48, %c1_49, %c0_50] : memref<18x18x128xf32, #tpu.memory_space<vmem>>, vector<8x16x128xf32>
    %c1_51 = arith.constant 1 : index
    %c0_52 = arith.constant 0 : index
    %47 = vector.load %arg5[%c1_51, %c0_52] : memref<9x128xf32, #tpu.memory_space<vmem>>, vector<1x128xf32>
    %48 = vector.shape_cast %47 : vector<1x128xf32> to vector<128xf32>
    %49 = vector.shape_cast %48 : vector<128xf32> to vector<1x1x128xf32>
    %50 = vector.broadcast %49 : vector<1x1x128xf32> to vector<8x16x128xf32>
    %51 = arith.mulf %46, %50 : vector<8x16x128xf32>
    %52 = arith.addf %45, %51 : vector<8x16x128xf32>
    %c0_53 = arith.constant 0 : index
    %c2 = arith.constant 2 : index
    %c0_54 = arith.constant 0 : index
    %53 = vector.load %arg15[%c0_53, %c2, %c0_54] : memref<18x18x128xf32, #tpu.memory_space<vmem>>, vector<8x16x128xf32>
    %c2_55 = arith.constant 2 : index
    %c0_56 = arith.constant 0 : index
    %54 = vector.load %arg5[%c2_55, %c0_56] : memref<9x128xf32, #tpu.memory_space<vmem>>, vector<1x128xf32>
    %55 = vector.shape_cast %54 : vector<1x128xf32> to vector<128xf32>
    %56 = vector.shape_cast %55 : vector<128xf32> to vector<1x1x128xf32>
    %57 = vector.broadcast %56 : vector<1x1x128xf32> to vector<8x16x128xf32>
    %58 = arith.mulf %53, %57 : vector<8x16x128xf32>
    %59 = arith.addf %52, %58 : vector<8x16x128xf32>
    %c1_57 = arith.constant 1 : index
    %c0_58 = arith.constant 0 : index
    %c0_59 = arith.constant 0 : index
    %60 = vector.load %arg15[%c1_57, %c0_58, %c0_59] : memref<18x18x128xf32, #tpu.memory_space<vmem>>, vector<8x16x128xf32>
    %c3 = arith.constant 3 : index
    %c0_60 = arith.constant 0 : index
    %61 = vector.load %arg5[%c3, %c0_60] : memref<9x128xf32, #tpu.memory_space<vmem>>, vector<1x128xf32>
    %62 = vector.shape_cast %61 : vector<1x128xf32> to vector<128xf32>
    %63 = vector.shape_cast %62 : vector<128xf32> to vector<1x1x128xf32>
    %64 = vector.broadcast %63 : vector<1x1x128xf32> to vector<8x16x128xf32>
    %65 = arith.mulf %60, %64 : vector<8x16x128xf32>
    %66 = arith.addf %59, %65 : vector<8x16x128xf32>
    %c1_61 = arith.constant 1 : index
    %c1_62 = arith.constant 1 : index
    %c0_63 = arith.constant 0 : index
    %67 = vector.load %arg15[%c1_61, %c1_62, %c0_63] : memref<18x18x128xf32, #tpu.memory_space<vmem>>, vector<8x16x128xf32>
    %c4 = arith.constant 4 : index
    %c0_64 = arith.constant 0 : index
    %68 = vector.load %arg5[%c4, %c0_64] : memref<9x128xf32, #tpu.memory_space<vmem>>, vector<1x128xf32>
    %69 = vector.shape_cast %68 : vector<1x128xf32> to vector<128xf32>
    %70 = vector.shape_cast %69 : vector<128xf32> to vector<1x1x128xf32>
    %71 = vector.broadcast %70 : vector<1x1x128xf32> to vector<8x16x128xf32>
    %72 = arith.mulf %67, %71 : vector<8x16x128xf32>
    %73 = arith.addf %66, %72 : vector<8x16x128xf32>
    %c1_65 = arith.constant 1 : index
    %c2_66 = arith.constant 2 : index
    %c0_67 = arith.constant 0 : index
    %74 = vector.load %arg15[%c1_65, %c2_66, %c0_67] : memref<18x18x128xf32, #tpu.memory_space<vmem>>, vector<8x16x128xf32>
    %c5 = arith.constant 5 : index
    %c0_68 = arith.constant 0 : index
    %75 = vector.load %arg5[%c5, %c0_68] : memref<9x128xf32, #tpu.memory_space<vmem>>, vector<1x128xf32>
    %76 = vector.shape_cast %75 : vector<1x128xf32> to vector<128xf32>
    %77 = vector.shape_cast %76 : vector<128xf32> to vector<1x1x128xf32>
    %78 = vector.broadcast %77 : vector<1x1x128xf32> to vector<8x16x128xf32>
    %79 = arith.mulf %74, %78 : vector<8x16x128xf32>
    %80 = arith.addf %73, %79 : vector<8x16x128xf32>
    %c2_69 = arith.constant 2 : index
    %c0_70 = arith.constant 0 : index
    %c0_71 = arith.constant 0 : index
    %81 = vector.load %arg15[%c2_69, %c0_70, %c0_71] : memref<18x18x128xf32, #tpu.memory_space<vmem>>, vector<8x16x128xf32>
    %c6 = arith.constant 6 : index
    %c0_72 = arith.constant 0 : index
    %82 = vector.load %arg5[%c6, %c0_72] : memref<9x128xf32, #tpu.memory_space<vmem>>, vector<1x128xf32>
    %83 = vector.shape_cast %82 : vector<1x128xf32> to vector<128xf32>
    %84 = vector.shape_cast %83 : vector<128xf32> to vector<1x1x128xf32>
    %85 = vector.broadcast %84 : vector<1x1x128xf32> to vector<8x16x128xf32>
    %86 = arith.mulf %81, %85 : vector<8x16x128xf32>
    %87 = arith.addf %80, %86 : vector<8x16x128xf32>
    %c2_73 = arith.constant 2 : index
    %c1_74 = arith.constant 1 : index
    %c0_75 = arith.constant 0 : index
    %88 = vector.load %arg15[%c2_73, %c1_74, %c0_75] : memref<18x18x128xf32, #tpu.memory_space<vmem>>, vector<8x16x128xf32>
    %c7 = arith.constant 7 : index
    %c0_76 = arith.constant 0 : index
    %89 = vector.load %arg5[%c7, %c0_76] : memref<9x128xf32, #tpu.memory_space<vmem>>, vector<1x128xf32>
    %90 = vector.shape_cast %89 : vector<1x128xf32> to vector<128xf32>
    %91 = vector.shape_cast %90 : vector<128xf32> to vector<1x1x128xf32>
    %92 = vector.broadcast %91 : vector<1x1x128xf32> to vector<8x16x128xf32>
    %93 = arith.mulf %88, %92 : vector<8x16x128xf32>
    %94 = arith.addf %87, %93 : vector<8x16x128xf32>
    %c2_77 = arith.constant 2 : index
    %c2_78 = arith.constant 2 : index
    %c0_79 = arith.constant 0 : index
    %95 = vector.load %arg15[%c2_77, %c2_78, %c0_79] : memref<18x18x128xf32, #tpu.memory_space<vmem>>, vector<8x16x128xf32>
    %c8_80 = arith.constant 8 : index
    %c0_81 = arith.constant 0 : index
    %96 = vector.load %arg5[%c8_80, %c0_81] : memref<9x128xf32, #tpu.memory_space<vmem>>, vector<1x128xf32>
    %97 = vector.shape_cast %96 : vector<1x128xf32> to vector<128xf32>
    %98 = vector.shape_cast %97 : vector<128xf32> to vector<1x1x128xf32>
    %99 = vector.broadcast %98 : vector<1x1x128xf32> to vector<8x16x128xf32>
    %100 = arith.mulf %95, %99 : vector<8x16x128xf32>
    %101 = arith.addf %94, %100 : vector<8x16x128xf32>
    %102 = vector.shape_cast %2 : vector<1x128xf32> to vector<1x1x128xf32>
    %103 = vector.broadcast %102 : vector<1x1x128xf32> to vector<8x16x128xf32>
    %104 = arith.mulf %101, %103 : vector<8x16x128xf32>
    %105 = vector.shape_cast %3 : vector<1x128xf32> to vector<1x1x128xf32>
    %106 = vector.broadcast %105 : vector<1x1x128xf32> to vector<8x16x128xf32>
    %107 = arith.addf %104, %106 : vector<8x16x128xf32>
    %cst_82 = arith.constant 0.000000e+00 : f32
    %108 = vector.broadcast %cst_82 : f32 to vector<8x16x128xf32>
    %109 = arith.maximumf %107, %108 : vector<8x16x128xf32>
    %110 = vector.shape_cast %109 : vector<8x16x128xf32> to vector<128x128xf32>
    %111 = arith.truncf %110 : vector<128x128xf32> to vector<128x128xbf16>
    %c0_83 = arith.constant 0 : index
    %c0_84 = arith.constant 0 : index
    %112 = vector.load %arg8[%c0_83, %c0_84] : memref<128x128xbf16, #tpu.memory_space<vmem>>, vector<128x128xbf16>
    %cst_85 = arith.constant dense<0.000000e+00> : vector<128x128xf32>
    %113 = tpu.matmul %111, %112, %cst_85 {dimension_numbers = #tpu.dot_dimension_numbers<[1], [0], [0], [1], [0, 0, 1, 1], [], []>} : vector<128x128xbf16>, vector<128x128xbf16>, vector<128x128xf32> -> vector<128x128xf32>
    %114 = vector.broadcast %4 : vector<1x128xf32> to vector<128x128xf32>
    %115 = arith.mulf %113, %114 : vector<128x128xf32>
    %116 = vector.broadcast %5 : vector<1x128xf32> to vector<128x128xf32>
    %117 = arith.addf %115, %116 : vector<128x128xf32>
    %c0_86 = arith.constant 0 : index
    %c0_87 = arith.constant 0 : index
    %c0_88 = arith.constant 0 : index
    %c0_89 = arith.constant 0 : index
    %118 = vector.load %arg1[%c0_86, %c0_87, %c0_88, %c0_89] : memref<1x16x16x128xbf16, #tpu.memory_space<vmem>>, vector<1x8x16x128xbf16>
    %119 = vector.shape_cast %118 : vector<1x8x16x128xbf16> to vector<8x16x128xbf16>
    %120 = vector.shape_cast %119 : vector<8x16x128xbf16> to vector<128x128xbf16>
    %c0_90 = arith.constant 0 : index
    %c0_91 = arith.constant 0 : index
    %121 = vector.load %arg11[%c0_90, %c0_91] : memref<128x128xbf16, #tpu.memory_space<vmem>>, vector<128x128xbf16>
    %cst_92 = arith.constant dense<0.000000e+00> : vector<128x128xf32>
    %122 = tpu.matmul %120, %121, %cst_92 {dimension_numbers = #tpu.dot_dimension_numbers<[1], [0], [0], [1], [0, 0, 1, 1], [], []>} : vector<128x128xbf16>, vector<128x128xbf16>, vector<128x128xf32> -> vector<128x128xf32>
    %c0_93 = arith.constant 0 : index
    %c0_94 = arith.constant 0 : index
    %123 = vector.load %arg12[%c0_93, %c0_94] : memref<1x128xf32, #tpu.memory_space<vmem>>, vector<1x128xf32>
    %124 = vector.broadcast %123 : vector<1x128xf32> to vector<128x128xf32>
    %125 = arith.mulf %122, %124 : vector<128x128xf32>
    %c0_95 = arith.constant 0 : index
    %c0_96 = arith.constant 0 : index
    %126 = vector.load %arg13[%c0_95, %c0_96] : memref<1x128xf32, #tpu.memory_space<vmem>>, vector<1x128xf32>
    %127 = vector.broadcast %126 : vector<1x128xf32> to vector<128x128xf32>
    %128 = arith.addf %125, %127 : vector<128x128xf32>
    %129 = arith.addf %117, %128 : vector<128x128xf32>
    %130 = vector.shape_cast %129 : vector<128x128xf32> to vector<8x16x128xf32>
    %c0_97 = arith.constant 0 : index
    %c0_98 = arith.constant 0 : index
    %c0_99 = arith.constant 0 : index
    %c0_100 = arith.constant 0 : index
    %131 = vector.load %arg14[%c0_97, %c0_98, %c0_99, %c0_100] : memref<1x16x16x128xf32, #tpu.memory_space<vmem>>, vector<1x8x16x128xf32>
    %132 = vector.shape_cast %131 : vector<1x8x16x128xf32> to vector<8x16x128xf32>
    %133 = vector.shape_cast %130 : vector<8x16x128xf32> to vector<1x8x16x128xf32>
    tpu.vector_store %arg14[%c0_97, %c0_98, %c0_99, %c0_100], %133 {strides = array<i32>} : memref<1x16x16x128xf32, #tpu.memory_space<vmem>>, vector<1x8x16x128xf32>,
    %cst_101 = arith.constant 0.000000e+00 : f32
    %134 = vector.broadcast %cst_101 : f32 to vector<8x16x128xf32>
    %c8_102 = arith.constant 8 : index
    %c0_103 = arith.constant 0 : index
    %c0_104 = arith.constant 0 : index
    %135 = vector.load %arg15[%c8_102, %c0_103, %c0_104] : memref<18x18x128xf32, #tpu.memory_space<vmem>>, vector<8x16x128xf32>
    %c0_105 = arith.constant 0 : index
    %c0_106 = arith.constant 0 : index
    %136 = vector.load %arg5[%c0_105, %c0_106] : memref<9x128xf32, #tpu.memory_space<vmem>>, vector<1x128xf32>
    %137 = vector.shape_cast %136 : vector<1x128xf32> to vector<128xf32>
    %138 = vector.shape_cast %137 : vector<128xf32> to vector<1x1x128xf32>
    %139 = vector.broadcast %138 : vector<1x1x128xf32> to vector<8x16x128xf32>
    %140 = arith.mulf %135, %139 : vector<8x16x128xf32>
    %141 = arith.addf %134, %140 : vector<8x16x128xf32>
    %c8_107 = arith.constant 8 : index
    %c1_108 = arith.constant 1 : index
    %c0_109 = arith.constant 0 : index
    %142 = vector.load %arg15[%c8_107, %c1_108, %c0_109] : memref<18x18x128xf32, #tpu.memory_space<vmem>>, vector<8x16x128xf32>
    %c1_110 = arith.constant 1 : index
    %c0_111 = arith.constant 0 : index
    %143 = vector.load %arg5[%c1_110, %c0_111] : memref<9x128xf32, #tpu.memory_space<vmem>>, vector<1x128xf32>
    %144 = vector.shape_cast %143 : vector<1x128xf32> to vector<128xf32>
    %145 = vector.shape_cast %144 : vector<128xf32> to vector<1x1x128xf32>
    %146 = vector.broadcast %145 : vector<1x1x128xf32> to vector<8x16x128xf32>
    %147 = arith.mulf %142, %146 : vector<8x16x128xf32>
    %148 = arith.addf %141, %147 : vector<8x16x128xf32>
    %c8_112 = arith.constant 8 : index
    %c2_113 = arith.constant 2 : index
    %c0_114 = arith.constant 0 : index
    %149 = vector.load %arg15[%c8_112, %c2_113, %c0_114] : memref<18x18x128xf32, #tpu.memory_space<vmem>>, vector<8x16x128xf32>
    %c2_115 = arith.constant 2 : index
    %c0_116 = arith.constant 0 : index
    %150 = vector.load %arg5[%c2_115, %c0_116] : memref<9x128xf32, #tpu.memory_space<vmem>>, vector<1x128xf32>
    %151 = vector.shape_cast %150 : vector<1x128xf32> to vector<128xf32>
    %152 = vector.shape_cast %151 : vector<128xf32> to vector<1x1x128xf32>
    %153 = vector.broadcast %152 : vector<1x1x128xf32> to vector<8x16x128xf32>
    %154 = arith.mulf %149, %153 : vector<8x16x128xf32>
    %155 = arith.addf %148, %154 : vector<8x16x128xf32>
    %c9_117 = arith.constant 9 : index
    %c0_118 = arith.constant 0 : index
    %c0_119 = arith.constant 0 : index
    %156 = vector.load %arg15[%c9_117, %c0_118, %c0_119] : memref<18x18x128xf32, #tpu.memory_space<vmem>>, vector<8x16x128xf32>
    %c3_120 = arith.constant 3 : index
    %c0_121 = arith.constant 0 : index
    %157 = vector.load %arg5[%c3_120, %c0_121] : memref<9x128xf32, #tpu.memory_space<vmem>>, vector<1x128xf32>
    %158 = vector.shape_cast %157 : vector<1x128xf32> to vector<128xf32>
    %159 = vector.shape_cast %158 : vector<128xf32> to vector<1x1x128xf32>
    %160 = vector.broadcast %159 : vector<1x1x128xf32> to vector<8x16x128xf32>
    %161 = arith.mulf %156, %160 : vector<8x16x128xf32>
    %162 = arith.addf %155, %161 : vector<8x16x128xf32>
    %c9_122 = arith.constant 9 : index
    %c1_123 = arith.constant 1 : index
    %c0_124 = arith.constant 0 : index
    %163 = vector.load %arg15[%c9_122, %c1_123, %c0_124] : memref<18x18x128xf32, #tpu.memory_space<vmem>>, vector<8x16x128xf32>
    %c4_125 = arith.constant 4 : index
    %c0_126 = arith.constant 0 : index
    %164 = vector.load %arg5[%c4_125, %c0_126] : memref<9x128xf32, #tpu.memory_space<vmem>>, vector<1x128xf32>
    %165 = vector.shape_cast %164 : vector<1x128xf32> to vector<128xf32>
    %166 = vector.shape_cast %165 : vector<128xf32> to vector<1x1x128xf32>
    %167 = vector.broadcast %166 : vector<1x1x128xf32> to vector<8x16x128xf32>
    %168 = arith.mulf %163, %167 : vector<8x16x128xf32>
    %169 = arith.addf %162, %168 : vector<8x16x128xf32>
    %c9_127 = arith.constant 9 : index
    %c2_128 = arith.constant 2 : index
    %c0_129 = arith.constant 0 : index
    %170 = vector.load %arg15[%c9_127, %c2_128, %c0_129] : memref<18x18x128xf32, #tpu.memory_space<vmem>>, vector<8x16x128xf32>
    %c5_130 = arith.constant 5 : index
    %c0_131 = arith.constant 0 : index
    %171 = vector.load %arg5[%c5_130, %c0_131] : memref<9x128xf32, #tpu.memory_space<vmem>>, vector<1x128xf32>
    %172 = vector.shape_cast %171 : vector<1x128xf32> to vector<128xf32>
    %173 = vector.shape_cast %172 : vector<128xf32> to vector<1x1x128xf32>
    %174 = vector.broadcast %173 : vector<1x1x128xf32> to vector<8x16x128xf32>
    %175 = arith.mulf %170, %174 : vector<8x16x128xf32>
    %176 = arith.addf %169, %175 : vector<8x16x128xf32>
    %c10 = arith.constant 10 : index
    %c0_132 = arith.constant 0 : index
    %c0_133 = arith.constant 0 : index
    %177 = vector.load %arg15[%c10, %c0_132, %c0_133] : memref<18x18x128xf32, #tpu.memory_space<vmem>>, vector<8x16x128xf32>
    %c6_134 = arith.constant 6 : index
    %c0_135 = arith.constant 0 : index
    %178 = vector.load %arg5[%c6_134, %c0_135] : memref<9x128xf32, #tpu.memory_space<vmem>>, vector<1x128xf32>
    %179 = vector.shape_cast %178 : vector<1x128xf32> to vector<128xf32>
    %180 = vector.shape_cast %179 : vector<128xf32> to vector<1x1x128xf32>
    %181 = vector.broadcast %180 : vector<1x1x128xf32> to vector<8x16x128xf32>
    %182 = arith.mulf %177, %181 : vector<8x16x128xf32>
    %183 = arith.addf %176, %182 : vector<8x16x128xf32>
    %c10_136 = arith.constant 10 : index
    %c1_137 = arith.constant 1 : index
    %c0_138 = arith.constant 0 : index
    %184 = vector.load %arg15[%c10_136, %c1_137, %c0_138] : memref<18x18x128xf32, #tpu.memory_space<vmem>>, vector<8x16x128xf32>
    %c7_139 = arith.constant 7 : index
    %c0_140 = arith.constant 0 : index
    %185 = vector.load %arg5[%c7_139, %c0_140] : memref<9x128xf32, #tpu.memory_space<vmem>>, vector<1x128xf32>
    %186 = vector.shape_cast %185 : vector<1x128xf32> to vector<128xf32>
    %187 = vector.shape_cast %186 : vector<128xf32> to vector<1x1x128xf32>
    %188 = vector.broadcast %187 : vector<1x1x128xf32> to vector<8x16x128xf32>
    %189 = arith.mulf %184, %188 : vector<8x16x128xf32>
    %190 = arith.addf %183, %189 : vector<8x16x128xf32>
    %c10_141 = arith.constant 10 : index
    %c2_142 = arith.constant 2 : index
    %c0_143 = arith.constant 0 : index
    %191 = vector.load %arg15[%c10_141, %c2_142, %c0_143] : memref<18x18x128xf32, #tpu.memory_space<vmem>>, vector<8x16x128xf32>
    %c8_144 = arith.constant 8 : index
    %c0_145 = arith.constant 0 : index
    %192 = vector.load %arg5[%c8_144, %c0_145] : memref<9x128xf32, #tpu.memory_space<vmem>>, vector<1x128xf32>
    %193 = vector.shape_cast %192 : vector<1x128xf32> to vector<128xf32>
    %194 = vector.shape_cast %193 : vector<128xf32> to vector<1x1x128xf32>
    %195 = vector.broadcast %194 : vector<1x1x128xf32> to vector<8x16x128xf32>
    %196 = arith.mulf %191, %195 : vector<8x16x128xf32>
    %197 = arith.addf %190, %196 : vector<8x16x128xf32>
    %198 = vector.shape_cast %2 : vector<1x128xf32> to vector<1x1x128xf32>
    %199 = vector.broadcast %198 : vector<1x1x128xf32> to vector<8x16x128xf32>
    %200 = arith.mulf %197, %199 : vector<8x16x128xf32>
    %201 = vector.shape_cast %3 : vector<1x128xf32> to vector<1x1x128xf32>
    %202 = vector.broadcast %201 : vector<1x1x128xf32> to vector<8x16x128xf32>
    %203 = arith.addf %200, %202 : vector<8x16x128xf32>
    %cst_146 = arith.constant 0.000000e+00 : f32
    %204 = vector.broadcast %cst_146 : f32 to vector<8x16x128xf32>
    %205 = arith.maximumf %203, %204 : vector<8x16x128xf32>
    %206 = vector.shape_cast %205 : vector<8x16x128xf32> to vector<128x128xf32>
    %207 = arith.truncf %206 : vector<128x128xf32> to vector<128x128xbf16>
    %c0_147 = arith.constant 0 : index
    %c0_148 = arith.constant 0 : index
    %208 = vector.load %arg8[%c0_147, %c0_148] : memref<128x128xbf16, #tpu.memory_space<vmem>>, vector<128x128xbf16>
    %cst_149 = arith.constant dense<0.000000e+00> : vector<128x128xf32>
    %209 = tpu.matmul %207, %208, %cst_149 {dimension_numbers = #tpu.dot_dimension_numbers<[1], [0], [0], [1], [0, 0, 1, 1], [], []>} : vector<128x128xbf16>, vector<128x128xbf16>, vector<128x128xf32> -> vector<128x128xf32>
    %210 = vector.broadcast %4 : vector<1x128xf32> to vector<128x128xf32>
    %211 = arith.mulf %209, %210 : vector<128x128xf32>
    %212 = vector.broadcast %5 : vector<1x128xf32> to vector<128x128xf32>
    %213 = arith.addf %211, %212 : vector<128x128xf32>
    %c0_150 = arith.constant 0 : index
    %c8_151 = arith.constant 8 : index
    %c0_152 = arith.constant 0 : index
    %c0_153 = arith.constant 0 : index
    %214 = vector.load %arg1[%c0_150, %c8_151, %c0_152, %c0_153] : memref<1x16x16x128xbf16, #tpu.memory_space<vmem>>, vector<1x8x16x128xbf16>
    %215 = vector.shape_cast %214 : vector<1x8x16x128xbf16> to vector<8x16x128xbf16>
    %216 = vector.shape_cast %215 : vector<8x16x128xbf16> to vector<128x128xbf16>
    %c0_154 = arith.constant 0 : index
    %c0_155 = arith.constant 0 : index
    %217 = vector.load %arg11[%c0_154, %c0_155] : memref<128x128xbf16, #tpu.memory_space<vmem>>, vector<128x128xbf16>
    %cst_156 = arith.constant dense<0.000000e+00> : vector<128x128xf32>
    %218 = tpu.matmul %216, %217, %cst_156 {dimension_numbers = #tpu.dot_dimension_numbers<[1], [0], [0], [1], [0, 0, 1, 1], [], []>} : vector<128x128xbf16>, vector<128x128xbf16>, vector<128x128xf32> -> vector<128x128xf32>
    %c0_157 = arith.constant 0 : index
    %c0_158 = arith.constant 0 : index
    %219 = vector.load %arg12[%c0_157, %c0_158] : memref<1x128xf32, #tpu.memory_space<vmem>>, vector<1x128xf32>
    %220 = vector.broadcast %219 : vector<1x128xf32> to vector<128x128xf32>
    %221 = arith.mulf %218, %220 : vector<128x128xf32>
    %c0_159 = arith.constant 0 : index
    %c0_160 = arith.constant 0 : index
    %222 = vector.load %arg13[%c0_159, %c0_160] : memref<1x128xf32, #tpu.memory_space<vmem>>, vector<1x128xf32>
    %223 = vector.broadcast %222 : vector<1x128xf32> to vector<128x128xf32>
    %224 = arith.addf %221, %223 : vector<128x128xf32>
    %225 = arith.addf %213, %224 : vector<128x128xf32>
    %226 = vector.shape_cast %225 : vector<128x128xf32> to vector<8x16x128xf32>
    %c0_161 = arith.constant 0 : index
    %c8_162 = arith.constant 8 : index
    %c0_163 = arith.constant 0 : index
    %c0_164 = arith.constant 0 : index
    %227 = vector.load %arg14[%c0_161, %c8_162, %c0_163, %c0_164] : memref<1x16x16x128xf32, #tpu.memory_space<vmem>>, vector<1x8x16x128xf32>
    %228 = vector.shape_cast %227 : vector<1x8x16x128xf32> to vector<8x16x128xf32>
    %229 = vector.shape_cast %226 : vector<8x16x128xf32> to vector<1x8x16x128xf32>
    tpu.vector_store %arg14[%c0_161, %c8_162, %c0_163, %c0_164], %229 {strides = array<i32>} : memref<1x16x16x128xf32, #tpu.memory_space<vmem>>, vector<1x8x16x128xf32>,
    return
  }
  func.func @transform_0(%arg0: i32) -> (i32, i32, i32, i32) {
    %c0_i32 = arith.constant 0 : i32
    %c0_i32_0 = arith.constant 0 : i32
    %c0_i32_1 = arith.constant 0 : i32
    %c0_i32_2 = arith.constant 0 : i32
    return %arg0, %c0_i32, %c0_i32_0, %c0_i32_1 : i32, i32, i32, i32
  }
  func.func @transform_1(%arg0: i32) -> (i32, i32) {
    %c0_i32 = arith.constant 0 : i32
    %c0_i32_0 = arith.constant 0 : i32
    %c0_i32_1 = arith.constant 0 : i32
    return %c0_i32, %c0_i32_0 : i32, i32
  }
  func.func @transform_2(%arg0: i32) -> (i32, i32) {
    %c0_i32 = arith.constant 0 : i32
    %c0_i32_0 = arith.constant 0 : i32
    %c0_i32_1 = arith.constant 0 : i32
    return %c0_i32, %c0_i32_0 : i32, i32
  }
  func.func @transform_3(%arg0: i32) -> (i32, i32) {
    %c0_i32 = arith.constant 0 : i32
    %c0_i32_0 = arith.constant 0 : i32
    %c0_i32_1 = arith.constant 0 : i32
    return %c0_i32, %c0_i32_0 : i32, i32
  }
  func.func @transform_4(%arg0: i32) -> (i32, i32) {
    %c0_i32 = arith.constant 0 : i32
    %c0_i32_0 = arith.constant 0 : i32
    %c0_i32_1 = arith.constant 0 : i32
    return %c0_i32, %c0_i32_0 : i32, i32
  }
  func.func @transform_5(%arg0: i32) -> (i32, i32) {
    %c0_i32 = arith.constant 0 : i32
    %c0_i32_0 = arith.constant 0 : i32
    %c0_i32_1 = arith.constant 0 : i32
    return %c0_i32, %c0_i32_0 : i32, i32
  }
  func.func @transform_6(%arg0: i32) -> (i32, i32) {
    %c0_i32 = arith.constant 0 : i32
    %c0_i32_0 = arith.constant 0 : i32
    %c0_i32_1 = arith.constant 0 : i32
    return %c0_i32, %c0_i32_0 : i32, i32
  }
  func.func @transform_7(%arg0: i32) -> (i32, i32) {
    %c0_i32 = arith.constant 0 : i32
    %c0_i32_0 = arith.constant 0 : i32
    %c0_i32_1 = arith.constant 0 : i32
    return %c0_i32, %c0_i32_0 : i32, i32
  }
  func.func @transform_8(%arg0: i32) -> (i32, i32) {
    %c0_i32 = arith.constant 0 : i32
    %c0_i32_0 = arith.constant 0 : i32
    %c0_i32_1 = arith.constant 0 : i32
    return %c0_i32, %c0_i32_0 : i32, i32
  }
  func.func @transform_9(%arg0: i32) -> (i32, i32) {
    %c0_i32 = arith.constant 0 : i32
    %c0_i32_0 = arith.constant 0 : i32
    %c0_i32_1 = arith.constant 0 : i32
    return %c0_i32, %c0_i32_0 : i32, i32
  }
  func.func @transform_10(%arg0: i32) -> (i32, i32) {
    %c0_i32 = arith.constant 0 : i32
    %c0_i32_0 = arith.constant 0 : i32
    %c0_i32_1 = arith.constant 0 : i32
    return %c0_i32, %c0_i32_0 : i32, i32
  }
  func.func @transform_11(%arg0: i32) -> (i32, i32) {
    %c0_i32 = arith.constant 0 : i32
    %c0_i32_0 = arith.constant 0 : i32
    %c0_i32_1 = arith.constant 0 : i32
    return %c0_i32, %c0_i32_0 : i32, i32
  }
  func.func @transform_12(%arg0: i32) -> (i32, i32) {
    %c0_i32 = arith.constant 0 : i32
    %c0_i32_0 = arith.constant 0 : i32
    %c0_i32_1 = arith.constant 0 : i32
    return %c0_i32, %c0_i32_0 : i32, i32
  }
  func.func @transform_13(%arg0: i32) -> (i32, i32, i32, i32) {
    %c0_i32 = arith.constant 0 : i32
    %c0_i32_0 = arith.constant 0 : i32
    %c0_i32_1 = arith.constant 0 : i32
    %c0_i32_2 = arith.constant 0 : i32
    return %arg0, %c0_i32, %c0_i32_0, %c0_i32_1 : i32, i32, i32, i32
  }
}

</mosaic_0001>

<bundles_post_ra>
// kernel: block_forward.1
= control target key start
LH: loop header
LB: loop body
LE: loop exit
PB: predicated region body
PF: predicated region fallthrough
CT: control target
= control target key end

     0   :  { %s3858_s25 = smov 0   ;;  %s5255_s0 = inlined_call_operand.vmem [shape: bf16[2,16,16,128], index: 0, kind: input, shape index: {}]   ;;  %s5256_s1 = inlined_call_operand.vmem [shape: bf16[128,128], index: 1, kind: input, shape index: {}]   ;;  %s5257_s2 = inlined_call_operand.vmem [shape: f32[1,128], index: 2, kind: input, shape index: {}]   ;;  %s5258_s3 = inlined_call_operand.vmem [shape: f32[1,128], index: 3, kind: input, shape index: {}]   ;;  %s5259_s4 = inlined_call_operand.vmem [shape: f32[9,128], index: 4, kind: input, shape index: {}]   ;;  %s5260_s5 = inlined_call_operand.vmem [shape: f32[1,128], index: 5, kind: input, shape index: {}]   ;;  %s5261_s6 = inlined_call_operand.vmem [shape: f32[1,128], index: 6, kind: input, shape index: {}]   ;;  %s5262_s7 = inlined_call_operand.vmem [shape: bf16[128,128], index: 7, kind: input, shape index: {}]   ;;  %s5263_s8 = inlined_call_operand.vmem [shape: f32[1,128], index: 8, kind: input, shape index: {}]   ;;  %s5264_s9 = inlined_call_operand.vmem [shape: f32[1,128], index: 9, kind: input, shape index: {}]   ;;  %s5265_s10 = inlined_call_operand.vmem [shape: bf16[128,128], index: 10, kind: input, shape index: {}]   ;;  %s5266_s11 = inlined_call_operand.vmem [shape: f32[1,128], index: 11, kind: input, shape index: {}]   ;;  %s5267_s12 = inlined_call_operand.vmem [shape: f32[1,128], index: 12, kind: input, shape index: {}]   ;;  %s5268_s13 = inlined_call_operand.vmem [shape: f32[2,16,16,128], index: 13, kind: output, shape index: {}]  }
   0x1 LB: > { %s3225_s26 = sadd.s32 4294967295, %s3785_s25   ;;  %p3229_p0 = scmp.ge.s32.totalorder %s3785_s25, 1  ;;  %s3785_s25 = sphi %s3858_s25, %s23_s25  }
   0x2   : > { %p387_p1 = scmp.lt.s32.totalorder %s3785_s25, 3 }
   0x4   : > { %p388_p2 = pnand %p3229_p0, %p387_p1 }
   0x5   : > { %p431_p3 = scmp.lt.s32.totalorder (!%p388_p2), %s3225_s26, 1 }
   0x6   : > { %391 = sbr.rel (%p388_p2) target bundleno = 644 (0x284), region = 72 }
   0xb   : > { %v3691_v0 = vld [vmem:[%s5256_s1 + $0x38] sm:$0xff]   ;;  %v3692_v1 = vld [vmem:[%s5256_s1 + $0x30] sm:$0xff]   ;;  %s5270_s26 = smov (!%p431_p3, %s3225_s26), 1  ;;  %v3693_v2 = vld [vmem:[%s5256_s1 + $0x28] sm:$0xff]   ;;  %v3787_v32 = vmov 0.0  }
   0xc   : > { %3490 = vmatprep.subr.bf16.mxu0 %v3691_v0  ;;  %v3696_v3 = vld [vmem:[%s5256_s1 + $0x38] sm:$0xff]   ;;  %s3392_s18 = sshll.u32 %s5270_s26, 7  ;;  %v3698_v4 = vld [vmem:[%s5256_s1 + $0x30] sm:$0xff]   ;;  %v3694_v5 = vld [vmem:[%s5256_s1 + $0x20] sm:$0xff]   ;;  %448 = vst [vmem:[#allocation2] sm:$0xff] %v3787_v32  ;;  %s3393_s17 = sshll.u32 %s5270_s26, 8 }
   0xd   : > { %3491 = vmatpush3.bf16.msra.mxu0 %v3691_v0  ;;  %3522 = vmatprep.subr.bf16.mxu1 %v3696_v3  ;;  %v3700_v6 = vld [vmem:[%s5256_s1 + $0x28] sm:$0xff]   ;;  %s3893_s29 = scalar_lea.vmem %s5255_s0, %s3392_s18  ;;  %v3695_v7 = vld [vmem:[%s5256_s1 + $0x18] sm:$0xff]   ;;  %v3702_v9 = vld [vmem:[%s5256_s1 + $0x20] sm:$0xff]   ;;  %449 = vst [vmem:[#allocation2 + $0x8] sm:$0xff] %v3787_v32  ;;  %s5097_s20 = scalar_lea.vmem %s5268_s13, %s3393_s17 }
   0xe   : > { %3492 = vmatprep.subr.bf16.mxu0 %v3692_v1  ;;  %3523 = vmatpush3.bf16.msra.mxu1 %v3696_v3  ;;  %v3703_v8 = vld [vmem:[%s3893_s29] sm:$0xff]   ;;  %v3697_v10 = vld [vmem:[%s5256_s1 + $0x10] sm:$0xff]   ;;  %v3705_v11 = vld [vmem:[%s5256_s1 + $0x18] sm:$0xff]   ;;  %450 = vst [vmem:[#allocation2 + $0x10] sm:$0x3] %v3787_v32 }
   0xf   : > { %3524 = vmatprep.subr.bf16.mxu1 %v3698_v4  ;;  %3506 = vmatprep.mubr.bf16.mxu0 %v3703_v8  ;;  %v3699_v12 = vld [vmem:[%s5256_s1 + $0x8] sm:$0xff]   ;;  %v3706_v13 = vld [vmem:[%s5256_s1 + $0x10] sm:$0xff]   ;;  %v3712_v14 = vld [vmem:[%s3893_s29 + $0x40] sm:$0xff]   ;;  %456 = vst [vmem:[#allocation2 + $0x18] sm:$0x1] %v3787_v32 }
  0x10   : > { %3538 = vmatprep.mubr.bf16.mxu1 %v3712_v14  ;;  %v3701_v15 = vld [vmem:[%s5256_s1] sm:$0xff]   ;;  %v3709_v16 = vld [vmem:[%s5256_s1 + $0x8] sm:$0xff]   ;;  %v3707_v19 = vld [vmem:[%s3893_s29 + $0x10] sm:$0xff]   ;;  %457 = vst [vmem:[#allocation2 + $0x30] sm:$0x1] %v3787_v32 }
  0x11   : > { %3493 = vmatpush3.bf16.msra.mxu0 %v3692_v1  ;;  %v3710_v17 = vld [vmem:[%s5256_s1] sm:$0xff]   ;;  %v3704_v18 = vld [vmem:[%s3893_s29 + $0x8] sm:$0xff]   ;;  %v3716_v21 = vld [vmem:[%s3893_s29 + $0x50] sm:$0xff]   ;;  %474 = vst [vmem:[#allocation2 + $0x29] sm:$0x1] %v3787_v32 }
  0x12   : > { %3494 = vmatprep.subr.bf16.mxu0 %v3693_v2  ;;  %3525 = vmatpush3.bf16.msra.mxu1 %v3698_v4  ;;  %v3714_v20 = vld [vmem:[%s3893_s29 + $0x48] sm:$0xff]   ;;  %v3708_v22 = vld [vmem:[%s3893_s29 + $0x18] sm:$0xff]   ;;  %v3711_v23 = vld [vmem:[%s3893_s29 + $0x20] sm:$0xff]   ;;  %475 = vst [vmem:[#allocation2 + $0x41] sm:$0x1] %v3787_v32 }
  0x13   : > { %3526 = vmatprep.subr.bf16.mxu1 %v3700_v6  ;;  %v3718_v24 = vld [vmem:[%s3893_s29 + $0x58] sm:$0xff]   ;;  %v3719_v25 = vld [vmem:[%s3893_s29 + $0x60] sm:$0xff]   ;;  %v3713_v26 = vld [vmem:[%s3893_s29 + $0x28] sm:$0xff]   ;;  %452 = vst [vmem:[#allocation2 + $0x198] sm:$0xff] %v3787_v32 }
  0x14   : > { %v3715_v27 = vld [vmem:[%s3893_s29 + $0x30] sm:$0xff]   ;;  %v3720_v28 = vld [vmem:[%s3893_s29 + $0x68] sm:$0xff]   ;;  %v3717_v30 = vld [vmem:[%s3893_s29 + $0x38] sm:$0xff]   ;;  %453 = vst [vmem:[#allocation2 + $0x1a0] sm:$0xff] %v3787_v32 }
  0x15   : > { %3495 = vmatpush3.bf16.msra.mxu0 %v3693_v2  ;;  %v3721_v29 = vld [vmem:[%s3893_s29 + $0x70] sm:$0xff]   ;;  %v3722_v31 = vld [vmem:[%s3893_s29 + $0x78] sm:$0xff]   ;;  %454 = vst [vmem:[#allocation2 + $0x1a8] sm:$0x3] %v3787_v32  ;;  %458 = vst [vmem:[#allocation2 + $0x48] sm:$0x1] %v3787_v32 }
  0x16   : > { %3496 = vmatprep.subr.bf16.mxu0 %v3694_v5  ;;  %3527 = vmatpush3.bf16.msra.mxu1 %v3700_v6  ;;  %459 = vst [vmem:[#allocation2 + $0x60] sm:$0x1] %v3787_v32  ;;  %460 = vst [vmem:[#allocation2 + $0x78] sm:$0x1] %v3787_v32  ;;  %v3723_v33 = vld [vmem:[%s5265_s10 + $0x38] sm:$0xff]   ;;  %v3724_v34 = vld [vmem:[%s5265_s10 + $0x30] sm:$0xff]  }
  0x17   : > { %3528 = vmatprep.subr.bf16.mxu1 %v3702_v9  ;;  %461 = vst [vmem:[#allocation2 + $0x90] sm:$0x1] %v3787_v32  ;;  %462 = vst [vmem:[#allocation2 + $0xa8] sm:$0x1] %v3787_v32  ;;  %v3725_v35 = vld [vmem:[%s5262_s7 + $0x38] sm:$0xff]   ;;  %v3726_v36 = vld [vmem:[%s5265_s10 + $0x28] sm:$0xff]  }
  0x18   : > { %463 = vst [vmem:[#allocation2 + $0xc0] sm:$0x1] %v3787_v32  ;;  %464 = vst [vmem:[#allocation2 + $0xd8] sm:$0x1] %v3787_v32  ;;  %v3727_v37 = vld [vmem:[%s5262_s7 + $0x30] sm:$0xff]   ;;  %v3728_v38 = vld [vmem:[%s5265_s10 + $0x20] sm:$0xff]  }
  0x19   : > { %3497 = vmatpush3.bf16.msra.mxu0 %v3694_v5  ;;  %465 = vst [vmem:[#allocation2 + $0xf0] sm:$0x1] %v3787_v32  ;;  %466 = vst [vmem:[#allocation2 + $0x108] sm:$0x1] %v3787_v32  ;;  %v3729_v39 = vld [vmem:[%s5262_s7 + $0x28] sm:$0xff]   ;;  %v3730_v40 = vld [vmem:[%s5265_s10 + $0x18] sm:$0xff]  }
  0x1a   : > { %3498 = vmatprep.subr.bf16.mxu0 %v3695_v7  ;;  %3529 = vmatpush3.bf16.msra.mxu1 %v3702_v9  ;;  %467 = vst [vmem:[#allocation2 + $0x120] sm:$0x1] %v3787_v32  ;;  %468 = vst [vmem:[#allocation2 + $0x138] sm:$0x1] %v3787_v32  ;;  %v3731_v41 = vld [vmem:[%s5262_s7 + $0x20] sm:$0xff]   ;;  %v3732_v42 = vld [vmem:[%s5265_s10 + $0x10] sm:$0xff]  }
  0x1b   : > { %3530 = vmatprep.subr.bf16.mxu1 %v3705_v11  ;;  %469 = vst [vmem:[#allocation2 + $0x150] sm:$0x1] %v3787_v32  ;;  %470 = vst [vmem:[#allocation2 + $0x168] sm:$0x1] %v3787_v32  ;;  %v3733_v43 = vld [vmem:[%s5262_s7 + $0x18] sm:$0xff]   ;;  %v3734_v44 = vld [vmem:[%s5265_s10 + $0x8] sm:$0xff]  }
  0x1c   : > { %471 = vst [vmem:[#allocation2 + $0x180] sm:$0x1] %v3787_v32  ;;  %476 = vst [vmem:[#allocation2 + $0x59] sm:$0x1] %v3787_v32  ;;  %v3735_v45 = vld [vmem:[%s5262_s7 + $0x10] sm:$0xff]   ;;  %v3736_v46 = vld [vmem:[%s5265_s10] sm:$0xff]  }
  0x1d   : > { %3499 = vmatpush3.bf16.msra.mxu0 %v3695_v7  ;;  %477 = vst [vmem:[#allocation2 + $0x71] sm:$0x1] %v3787_v32  ;;  %478 = vst [vmem:[#allocation2 + $0x89] sm:$0x1] %v3787_v32  ;;  %v3737_v47 = vld [vmem:[%s5262_s7 + $0x8] sm:$0xff]   ;;  %v3738_v48 = vld [vmem:[%s3893_s29] sm:$0xff]  }
  0x1e   : > { %3500 = vmatprep.subr.bf16.mxu0 %v3697_v10  ;;  %3531 = vmatpush3.bf16.msra.mxu1 %v3705_v11  ;;  %479 = vst [vmem:[#allocation2 + $0xa1] sm:$0x1] %v3787_v32  ;;  %480 = vst [vmem:[#allocation2 + $0xb9] sm:$0x1] %v3787_v32  ;;  %v3739_v49 = vld [vmem:[%s3893_s29 + $0x8] sm:$0xff]   ;;  %v3740_v50 = vld [vmem:[%s5265_s10 + $0x38] sm:$0xff]  }
  0x1f   : > { %3532 = vmatprep.subr.bf16.mxu1 %v3706_v13  ;;  %481 = vst [vmem:[#allocation2 + $0xd1] sm:$0x1] %v3787_v32  ;;  %482 = vst [vmem:[#allocation2 + $0xe9] sm:$0x1] %v3787_v32  ;;  %v3741_v51 = vld [vmem:[%s5262_s7] sm:$0xff]   ;;  %v3742_v52 = vld [vmem:[%s5265_s10 + $0x30] sm:$0xff]  }
  0x20   : > { %483 = vst [vmem:[#allocation2 + $0x101] sm:$0x1] %v3787_v32  ;;  %484 = vst [vmem:[#allocation2 + $0x119] sm:$0x1] %v3787_v32  ;;  %v3997_v53 = vld [vmem:[%s5262_s7 + $0x38] sm:$0xff]   ;;  %v3744_v54 = vld [vmem:[%s3893_s29 + $0x10] sm:$0xff]  }
  0x21   : > { %3501 = vmatpush3.bf16.msra.mxu0 %v3697_v10  ;;  %485 = vst [vmem:[#allocation2 + $0x131] sm:$0x1] %v3787_v32  ;;  %486 = vst [vmem:[#allocation2 + $0x149] sm:$0x1] %v3787_v32  ;;  %v3745_v55 = vld [vmem:[%s3893_s29 + $0x18] sm:$0xff]   ;;  %v3746_v56 = vld [vmem:[%s5265_s10 + $0x28] sm:$0xff]  }
  0x22   : > { %3502 = vmatprep.subr.bf16.mxu0 %v3699_v12  ;;  %3533 = vmatpush3.bf16.msra.mxu1 %v3706_v13  ;;  %487 = vst [vmem:[#allocation2 + $0x161] sm:$0x1] %v3787_v32  ;;  %488 = vst [vmem:[#allocation2 + $0x179] sm:$0x1] %v3787_v32  ;;  %v3748_v57 = vld [vmem:[%s5265_s10 + $0x20] sm:$0xff]   ;;  %v3751_v59 = vld [vmem:[%s3893_s29 + $0x28] sm:$0xff]  }
  0x23   : > { %3534 = vmatprep.subr.bf16.mxu1 %v3709_v16  ;;  %489 = vst [vmem:[#allocation2 + $0x191] sm:$0x1] %v3787_v32  ;;  %455 = vst [vmem:[#allocation2] sm:$0x1] %v3787_v32  ;;  %v3750_v58 = vld [vmem:[%s3893_s29 + $0x20] sm:$0xff]   ;;  %v3752_v60 = vld [vmem:[%s5265_s10 + $0x18] sm:$0xff]  }
  0x24   : > { %473 = vst [vmem:[#allocation2 + $0x11] sm:$0x1] %v3787_v32  ;;  %472 = vst [vmem:[#allocation2 + $0x198] sm:$0x1] %v3787_v32  ;;  %v3754_v61 = vld [vmem:[%s5265_s10 + $0x10] sm:$0xff]   ;;  %v3757_v63 = vld [vmem:[%s3893_s29 + $0x38] sm:$0xff]  }
  0x25   : > { %3503 = vmatpush3.bf16.msra.mxu0 %v3699_v12  ;;  %490 = vst [vmem:[#allocation2 + $0x1a9] sm:$0x1] %v3787_v32  ;;  %v3756_v62 = vld [vmem:[%s3893_s29 + $0x30] sm:$0xff]   ;;  %v3758_v0 = vld [vmem:[%s5265_s10 + $0x8] sm:$0xff]   ;;  %v3760_v1 = vld [vmem:[%s5265_s10] sm:$0xff]  }
  0x26   : > { %3504 = vmatprep.subr.bf16.mxu0 %v3701_v15  ;;  %3535 = vmatpush3.bf16.msra.mxu1 %v3709_v16  ;;  %v4027_v3 = vld [vmem:[%s5259_s4] ss:$0 sm:$0xff]  ;;  %v1137_v4 = vld [vmem:[#allocation2 + $0x1] sm:$0xff]  ;;  %v1138_v5 = vld [vmem:[#allocation2 + $0x9] sm:$0xff] }
  0x27   : > { %3536 = vmatprep.subr.bf16.mxu1 %v3710_v17  ;;  %v4032_v6 = vld [vmem:[%s5259_s4 + $0x1] ss:$0 sm:$0xff]  ;;  %v4037_v7 = vld [vmem:[%s5257_s2] ss:$0 sm:$0xff]  ;;  %v1106_v9 = vmul.f32 0.0, %v4027_v3  ;;  %v1190_v12 = vld [vmem:[#allocation2 + $0x2] sm:$0xff] }
  0x28   : > { %v1158_v10 = vmul.f32 %v4032_v6, %v1137_v4  ;;  %v1159_v11 = vmul.f32 %v4032_v6, %v1138_v5  ;;  %v4046_v14 = vld [vmem:[%s5259_s4 + $0x2] ss:$0 sm:$0xff]  ;;  %v4116_v5 = vld [vmem:[%s5259_s4 + $0x6] ss:$0 sm:$0xff] }
  0x29   : > { %3505 = vmatpush3.bf16.msra.mxu0 %v3701_v15  ;;  %v4051_v15 = vld [vmem:[%s5258_s3] ss:$0 sm:$0xff] }
  0x2a   : > { %3537 = vmatpush3.bf16.msra.mxu1 %v3710_v17  ;;  %3554 = vmatprep.subr.bf16.mxu0 %v3725_v35  ;;  %v1084_v2 = vld [vmem:[#allocation2] sm:$0xff] }
  0x2b   : > { %3586 = vmatprep.subr.bf16.mxu1 %v3723_v33  ;;  %v1105_v8 = vmul.f32 %v4027_v3, %v1084_v2  ;;  %v1191_v13 = vld [vmem:[#allocation2 + $0xa] sm:$0xff] }
  0x2c   : > { %3507 = vmatmul.mubr.bf16.vlgmr.msra.gmra.mxu0 %v3704_v18 }
  0x2d   : > { %3510 = vmatprep.mubr.bf16.mxu0 %v3707_v19  ;;  %3539 = vmatmul.mubr.bf16.vlgmr.msra.gmra.mxu1 %v3714_v20  ;;  %v1174_v19 = vadd.f32 %v1158_v10, %v1105_v8  ;;  %v1175_v20 = vadd.f32 %v1159_v11, %v1106_v9 }
  0x2e   : > { %3542 = vmatprep.mubr.bf16.mxu1 %v3716_v21  ;;  %3587 = vmatpush3.bf16.msra.mxu1 %v3723_v33  ;;  %v1211_v21 = vmul.f32 %v4046_v14, %v1190_v12  ;;  %v4070_v33 = vld [vmem:[%s5259_s4 + $0x4] ss:$0 sm:$0xff] }
  0x2f   : > { %3588 = vmatprep.subr.bf16.mxu1 %v3724_v34  ;;  %3555 = vmatpush3.bf16.msra.mxu0 %v3725_v35 }
  0x30   : > { %3556 = vmatprep.subr.bf16.mxu0 %v3727_v37 }
  0x32   : > { %3589 = vmatpush3.bf16.msra.mxu1 %v3724_v34 }
  0x33   : > { %3590 = vmatprep.subr.bf16.mxu1 %v3726_v36  ;;  %3557 = vmatpush3.bf16.msra.mxu0 %v3727_v37 }
  0x34   : > { %3511 = vmatmul.mubr.bf16.gmra.mxu0 %v3708_v22  ;;  %3558 = vmatprep.subr.bf16.mxu0 %v3729_v39  ;;  %v1212_v22 = vmul.f32 %v4046_v14, %v1191_v13  ;;  %v4128_v13 = vld [vmem:[%s5259_s4 + $0x3] ss:$0 sm:$0xff] }
  0x35   : > { %3514 = vmatprep.mubr.bf16.mxu0 %v3711_v23  ;;  %3543 = vmatmul.mubr.bf16.gmra.mxu1 %v3718_v24 }
  0x36   : > { %3546 = vmatprep.mubr.bf16.mxu1 %v3719_v25  ;;  %3591 = vmatpush3.bf16.msra.mxu1 %v3726_v36  ;;  %v3762_v25 = vld [vmem:[%s3893_s29 + $0x40] sm:$0xff]   ;;  %v4073_v36 = vadd.f32 %v1211_v21, %v1174_v19  ;;  %v4075_v37 = vadd.f32 %v1212_v22, %v1175_v20 }
  0x37   : > { %3592 = vmatprep.subr.bf16.mxu1 %v3728_v38  ;;  %3559 = vmatpush3.bf16.msra.mxu0 %v3729_v39 }
  0x38   : > { %3560 = vmatprep.subr.bf16.mxu0 %v3731_v41 }
  0x3a   : > { %3593 = vmatpush3.bf16.msra.mxu1 %v3728_v38 }
  0x3b   : > { %3594 = vmatprep.subr.bf16.mxu1 %v3730_v40  ;;  %3561 = vmatpush3.bf16.msra.mxu0 %v3731_v41 }
  0x3c   : > { %3515 = vmatmul.mubr.bf16.gmra.mxu0 %v3713_v26  ;;  %3562 = vmatprep.subr.bf16.mxu0 %v3733_v43  ;;  %v3763_v26 = vld [vmem:[%s3893_s29 + $0x48] sm:$0xff]  }
  0x3d   : > { %3518 = vmatprep.mubr.bf16.mxu0 %v3715_v27  ;;  %3547 = vmatmul.mubr.bf16.gmra.mxu1 %v3720_v28  ;;  %v4063_v28 = vld [vmem:[%s5259_s4 + $0x7] ss:$0 sm:$0xff] }
  0x3e   : > { %3550 = vmatprep.mubr.bf16.mxu1 %v3721_v29  ;;  %3595 = vmatpush3.bf16.msra.mxu1 %v3730_v40 }
  0x3f   : > { %3596 = vmatprep.subr.bf16.mxu1 %v3732_v42  ;;  %3563 = vmatpush3.bf16.msra.mxu0 %v3733_v43 }
  0x40   : > { %3564 = vmatprep.subr.bf16.mxu0 %v3735_v45 }
  0x42   : > { %3597 = vmatpush3.bf16.msra.mxu1 %v3732_v42 }
  0x43   : > { %3598 = vmatprep.subr.bf16.mxu1 %v3734_v44  ;;  %3565 = vmatpush3.bf16.msra.mxu0 %v3735_v45 }
  0x44   : > { %3519 = vmatmul.mubr.bf16.gmra.mxu0 %v3717_v30  ;;  %3566 = vmatprep.subr.bf16.mxu0 %v3737_v47 }
  0x45   : > { %3551 = vmatmul.mubr.bf16.gmra.mxu1 %v3722_v31 }
  0x46   : > { %3599 = vmatpush3.bf16.msra.mxu1 %v3734_v44  ;;  %3602 = vmatprep.mubr.bf16.mxu1 %v3738_v48 }
  0x47   : > { %3600 = vmatprep.subr.bf16.mxu1 %v3736_v46  ;;  %3567 = vmatpush3.bf16.msra.mxu0 %v3737_v47 }
  0x48   : > { %3568 = vmatprep.subr.bf16.mxu0 %v3741_v51 }
  0x4a   : > { %3601 = vmatpush3.bf16.msra.mxu1 %v3736_v46 }
  0x4b   : > { %3650 = vmatprep.subr.bf16.mxu1 %v3740_v50  ;;  %3569 = vmatpush3.bf16.msra.mxu0 %v3741_v51 }
  0x4c   : > { %3618 = vmatprep.subr.bf16.mxu0 %v3997_v53 }
  0x4d   : > { %3603 = vmatmul.mubr.bf16.vlgmr.msra.gmra.mxu1 %v3739_v49 }
  0x4e   : > { %3651 = vmatpush3.bf16.msra.mxu1 %v3740_v50  ;;  %3606 = vmatprep.mubr.bf16.mxu1 %v3744_v54 }
  0x4f   : > { %3652 = vmatprep.subr.bf16.mxu1 %v3742_v52 }
  0x52   : > { %3653 = vmatpush3.bf16.msra.mxu1 %v3742_v52 }
  0x53   : > { %3654 = vmatprep.subr.bf16.mxu1 %v3746_v56 }
  0x55   : > { %3607 = vmatmul.mubr.bf16.gmra.mxu1 %v3745_v55 }
  0x56   : > { %3655 = vmatpush3.bf16.msra.mxu1 %v3746_v56  ;;  %3610 = vmatprep.mubr.bf16.mxu1 %v3750_v58 }
  0x57   : > { %3656 = vmatprep.subr.bf16.mxu1 %v3748_v57 }
  0x5a   : > { %3657 = vmatpush3.bf16.msra.mxu1 %v3748_v57 }
  0x5b   : > { %3658 = vmatprep.subr.bf16.mxu1 %v3752_v60 }
  0x5d   : > { %3611 = vmatmul.mubr.bf16.gmra.mxu1 %v3751_v59 }
  0x5e   : > { %3659 = vmatpush3.bf16.msra.mxu1 %v3752_v60  ;;  %3614 = vmatprep.mubr.bf16.mxu1 %v3756_v62 }
  0x5f   : > { %3660 = vmatprep.subr.bf16.mxu1 %v3754_v61 }
  0x62   : > { %3661 = vmatpush3.bf16.msra.mxu1 %v3754_v61 }
  0x63   : > { %3662 = vmatprep.subr.bf16.mxu1 %v3758_v0 }
  0x65   : > { %3615 = vmatmul.mubr.bf16.gmra.mxu1 %v3757_v63 }
  0x66   : > { %3663 = vmatpush3.bf16.msra.mxu1 %v3758_v0  ;;  %3666 = vmatprep.mubr.bf16.mxu1 %v3762_v25 }
  0x67   : > { %3664 = vmatprep.subr.bf16.mxu1 %v3760_v1 }
  0x6a   : > { %3665 = vmatpush3.bf16.msra.mxu1 %v3760_v1 }
  0x6d   : > { %3667 = vmatmul.mubr.bf16.vlgmr.msra.gmra.mxu1 %v3763_v26 }
  0xec   : > { %v3508_v16 = vpop.f32.mrf.mxu0 }
  0xed   : > { %v724_v17 = vmul.f32 %v3508_v16, %v4037_v7  ;;  %v3540_v32 = vpop.f32.mrf.mxu1 }
  0xee   : > { %v653_v18 = vpop.f32.mrf.mxu0  ;;  %v1021_v35 = vmul.f32 %v3540_v32, %v4037_v7 }
  0xef   : > { %v746_v23 = vadd.f32 %v4051_v15, %v724_v17  ;;  %v722_v24 = vmul.f32 %v4037_v7, %v653_v18  ;;  %v956_v41 = vpop.f32.mrf.mxu1 }
  0xf0   : > { %v3509_v27 = vpop.f32.mrf.mxu0  ;;  %v1037_v44 = vadd.f32 %v4051_v15, %v1021_v35  ;;  %v1019_v45 = vmul.f32 %v4037_v7, %v956_v41 }
  0xf1   : > { %v762_v29 = vmax.f32 %v746_v23, 0.0  ;;  %v744_v30 = vadd.f32 %v4051_v15, %v722_v24  ;;  %v725_v31 = vmul.f32 %v3509_v27, %v4037_v7  ;;  %v3541_v51 = vpop.f32.mrf.mxu1 }
  0xf2   : > { %v656_v34 = vpop.f32.mrf.mxu0  ;;  %v1053_v55 = vmax.f32 %v1037_v44, 0.0  ;;  %v1035_v56 = vadd.f32 %v4051_v15, %v1019_v45  ;;  %v1022_v57 = vmul.f32 %v3541_v51, %v4037_v7 }
  0xf3   : > { %779 = vst [vmem:[#allocation2 + $0x31] sm:$0xff] %v762_v29  ;;  %v760_v38 = vmax.f32 %v744_v30, 0.0  ;;  %v747_v39 = vadd.f32 %v4051_v15, %v725_v31  ;;  %v723_v40 = vmul.f32 %v4037_v7, %v656_v34  ;;  %v4080_v42 = vmul.f32 %v4063_v28, %v762_v29  ;;  %v959_v62 = vpop.f32.mrf.mxu1 }
  0xf4   : > { %v3512_v43 = vpop.f32.mrf.mxu0  ;;  %v4085_v46 = vmul.f32 %v4070_v33, %v762_v29  ;;  %v4088_v47 = vmul.f32 %v4032_v6, %v762_v29  ;;  %1070 = vst [vmem:[#allocation2 + $0xf1] sm:$0xff] %v1053_v55  ;;  %v1051_v1 = vmax.f32 %v1035_v56, 0.0  ;;  %v1038_v2 = vadd.f32 %v4051_v15, %v1022_v57 }
  0xf5   : > { %777 = vst [vmem:[#allocation2 + $0x19] sm:$0xff] %v760_v38  ;;  %v4090_v48 = vmax.f32 %v747_v39, 0.0  ;;  %v745_v49 = vadd.f32 %v4051_v15, %v723_v40  ;;  %v728_v50 = vmul.f32 %v3512_v43, %v4037_v7  ;;  %v4095_v52 = vmul.f32 %v4070_v33, %v760_v38  ;;  %v3544_v12 = vpop.f32.mrf.mxu1 }
  0xf6   : > { %v669_v54 = vpop.f32.mrf.mxu0  ;;  %v4100_v58 = vmul.f32 %v4032_v6, %v760_v38  ;;  %v1020_v4 = vmul.f32 %v4037_v7, %v959_v62  ;;  %1068 = vst [vmem:[#allocation2 + $0xd9] sm:$0xff] %v1051_v1  ;;  %v1054_v18 = vmax.f32 %v1038_v2, 0.0  ;;  %v1025_v20 = vmul.f32 %v3544_v12, %v4037_v7 }
  0xf7   : > { %780 = vst [vmem:[#allocation2 + $0x39] sm:$0xff] %v4090_v48  ;;  %v761_v59 = vmax.f32 %v745_v49, 0.0  ;;  %v4104_v60 = vadd.f32 %v4051_v15, %v728_v50  ;;  %v726_v61 = vmul.f32 %v4037_v7, %v669_v54  ;;  %v4109_v63 = vmul.f32 %v4063_v28, %v4090_v48  ;;  %v972_v26 = vpop.f32.mrf.mxu1 }
  0xf8   : > { %v3513_v0 = vpop.f32.mrf.mxu0  ;;  %v4120_v8 = vmul.f32 %v4070_v33, %v4090_v48  ;;  %v1036_v19 = vadd.f32 %v4051_v15, %v1020_v4  ;;  %1071 = vst [vmem:[#allocation2 + $0xf9] sm:$0xff] %v1054_v18  ;;  %v1041_v31 = vadd.f32 %v4051_v15, %v1025_v20  ;;  %v1023_v32 = vmul.f32 %v4037_v7, %v972_v26 }
  0xf9   : > { %778 = vst [vmem:[#allocation2 + $0x21] sm:$0xff] %v761_v59  ;;  %v766_v9 = vmax.f32 %v4104_v60, 0.0  ;;  %v748_v10 = vadd.f32 %v4051_v15, %v726_v61  ;;  %v729_v11 = vmul.f32 %v3513_v0, %v4037_v7  ;;  %v4131_v16 = vmul.f32 %v4070_v33, %v761_v59  ;;  %v3545_v41 = vpop.f32.mrf.mxu1 }
  0xfa   : > { %v672_v17 = vpop.f32.mrf.mxu0  ;;  %v4135_v21 = vld [vmem:[#allocation2 + $0x30] sm:$0xff]  ;;  %v4138_v22 = vmul.f32 %v4032_v6, %v761_v59  ;;  %v1052_v30 = vmax.f32 %v1036_v19, 0.0  ;;  %v1057_v45 = vmax.f32 %v1041_v31, 0.0  ;;  %v1039_v49 = vadd.f32 %v4051_v15, %v1023_v32 }
  0xfb   : > { %783 = vst [vmem:[#allocation2 + $0x61] sm:$0xff] %v766_v9  ;;  %v4142_v23 = vmax.f32 %v748_v10, 0.0  ;;  %v751_v24 = vadd.f32 %v4051_v15, %v729_v11  ;;  %v727_v25 = vmul.f32 %v4037_v7, %v672_v17  ;;  %v4148_v27 = vmul.f32 %v4116_v5, %v4135_v21  ;;  %v975_v59 = vpop.f32.mrf.mxu1 }
  0xfc   : > { %v3516_v29 = vpop.f32.mrf.mxu0  ;;  %v1243_v34 = vld [vmem:[#allocation2 + $0x18] sm:$0xff]  ;;  %v4154_v35 = vmul.f32 %v4128_v13, %v4135_v21  ;;  %1069 = vst [vmem:[#allocation2 + $0xe1] sm:$0xff] %v1052_v30  ;;  %v1026_v50 = vmul.f32 %v3545_v41, %v4037_v7  ;;  %1074 = vst [vmem:[#allocation2 + $0x121] sm:$0xff] %v1057_v45  ;;  %v1055_v0 = vmax.f32 %v1039_v49, 0.0  ;;  %v1024_v2 = vmul.f32 %v4037_v7, %v975_v59  ;;  %v4204_v41 = vld [vmem:[%s5259_s4 + $0x5] ss:$0 sm:$0xff] }
  0xfd   : > { %781 = vst [vmem:[#allocation2 + $0x49] sm:$0xff] %v4142_v23  ;;  %v4157_v38 = vmax.f32 %v751_v24, 0.0  ;;  %v749_v39 = vadd.f32 %v4051_v15, %v727_v25  ;;  %v732_v40 = vmul.f32 %v3516_v29, %v4037_v7  ;;  %v1264_v43 = vmul.f32 %v4128_v13, %v1243_v34  ;;  %v3548_v17 = vpop.f32.mrf.mxu1 }
  0xfe   : > { %v685_v44 = vpop.f32.mrf.mxu0  ;;  %v4164_v51 = vld [vmem:[#allocation2 + $0x38] sm:$0xff]  ;;  %v4167_v54 = vmul.f32 %v4027_v3, %v1243_v34  ;;  %v1042_v1 = vadd.f32 %v4051_v15, %v1026_v50  ;;  %1072 = vst [vmem:[#allocation2 + $0x109] sm:$0xff] %v1055_v0  ;;  %v1040_v25 = vadd.f32 %v4051_v15, %v1024_v2  ;;  %v1029_v26 = vmul.f32 %v3548_v17, %v4037_v7  ;;  %v3765_v50 = vld [vmem:[%s3893_s29 + $0x50] sm:$0xff]  }
  0xff   : > { %784 = vst [vmem:[#allocation2 + $0x69] sm:$0xff] %v4157_v38  ;;  %v4170_v55 = vmax.f32 %v749_v39, 0.0  ;;  %v754_v56 = vadd.f32 %v4051_v15, %v732_v40  ;;  %v730_v57 = vmul.f32 %v4037_v7, %v685_v44  ;;  %v1280_v61 = vadd.f32 %v1264_v43, %v4073_v36  ;;  %v988_v34 = vpop.f32.mrf.mxu1  ;;  %3670 = vmatprep.mubr.bf16.mxu1 %v3765_v50 }
 0x100   : > { %v3517_v62 = vpop.f32.mrf.mxu0  ;;  %v4177_v4 = vld [vmem:[#allocation2 + $0x20] sm:$0xff]  ;;  %v4181_v10 = vmul.f32 %v4116_v5, %v4164_v51  ;;  %v1058_v24 = vmax.f32 %v1042_v1, 0.0  ;;  %v1045_v44 = vadd.f32 %v4051_v15, %v1029_v26  ;;  %v1027_v45 = vmul.f32 %v4037_v7, %v988_v34 }
 0x101   : > { %782 = vst [vmem:[#allocation2 + $0x51] sm:$0xff] %v4170_v55  ;;  %v770_v11 = vmax.f32 %v754_v56, 0.0  ;;  %v4185_v12 = vadd.f32 %v4051_v15, %v730_v57  ;;  %v733_v36 = vmul.f32 %v3517_v62, %v4037_v7  ;;  %v1265_v18 = vmul.f32 %v4128_v13, %v4177_v4  ;;  %v4190_v19 = vld [vmem:[#allocation2 + $0x1a] sm:$0xff]  ;;  %v4199_v40 = vld [vmem:[#allocation2 + $0x22] sm:$0xff]  ;;  %v3549_v59 = vpop.f32.mrf.mxu1 }
 0x102   : > { %v688_v20 = vpop.f32.mrf.mxu0  ;;  %v1333_v29 = vadd.f32 %v4095_v52, %v1280_v61  ;;  %1075 = vst [vmem:[#allocation2 + $0x129] sm:$0xff] %v1058_v24  ;;  %v1056_v52 = vmax.f32 %v1040_v25, 0.0  ;;  %v1370_v49 = vmul.f32 %v4204_v41, %v4190_v19  ;;  %v1061_v0 = vmax.f32 %v1045_v44, 0.0  ;;  %v4235_v44 = vld [vmem:[%s5259_s4 + $0x8] ss:$0 sm:$0xff] }
 0x103   : > { %787 = vst [vmem:[#allocation2 + $0x91] sm:$0xff] %v770_v11  ;;  %v768_v30 = vmax.f32 %v4185_v12, 0.0  ;;  %v755_v31 = vadd.f32 %v4051_v15, %v733_v36  ;;  %v731_v32 = vmul.f32 %v4037_v7, %v688_v20  ;;  %v1281_v39 = vadd.f32 %v1265_v18, %v4075_v37  ;;  %v991_v20 = vpop.f32.mrf.mxu1 }
 0x104   : > { %v3520_v43 = vpop.f32.mrf.mxu0  ;;  %1073 = vst [vmem:[#allocation2 + $0x111] sm:$0xff] %v1056_v52  ;;  %v1043_v1 = vadd.f32 %v4051_v15, %v1027_v45  ;;  %v1030_v2 = vmul.f32 %v3549_v59, %v4037_v7  ;;  %v1371_v11 = vmul.f32 %v4204_v41, %v4199_v40  ;;  %1078 = vst [vmem:[#allocation2 + $0x151] sm:$0xff] %v1061_v0  ;;  %v4240_v59 = vld [vmem:[#allocation2 + $0x32] sm:$0xff] }
 0x105   : > { %785 = vst [vmem:[#allocation2 + $0x79] sm:$0xff] %v768_v30  ;;  %v771_v37 = vmax.f32 %v755_v31, 0.0  ;;  %v4214_v56 = vadd.f32 %v4051_v15, %v731_v32  ;;  %v736_v57 = vmul.f32 %v3520_v43, %v4037_v7  ;;  %v1334_v61 = vadd.f32 %v4131_v16, %v1281_v39  ;;  %v3552_v52 = vpop.f32.mrf.mxu1 }
 0x106   : > { %v701_v62 = vpop.f32.mrf.mxu0  ;;  %v1386_v16 = vadd.f32 %v1370_v49, %v1333_v29  ;;  %v1059_v25 = vmax.f32 %v1043_v1, 0.0  ;;  %v1046_v26 = vadd.f32 %v4051_v15, %v1030_v2  ;;  %v1028_v31 = vmul.f32 %v4037_v7, %v991_v20 }
 0x107   : > { %788 = vst [vmem:[#allocation2 + $0x99] sm:$0xff] %v771_v37  ;;  %v769_v36 = vmax.f32 %v4214_v56, 0.0  ;;  %v758_v17 = vadd.f32 %v4051_v15, %v736_v57  ;;  %v734_v18 = vmul.f32 %v4037_v7, %v701_v62  ;;  %v1387_v32 = vadd.f32 %v1371_v11, %v1334_v61  ;;  %v4242_v61 = vld [vmem:[#allocation2 + $0x3a] sm:$0xff]  ;;  %v1004_v2 = vpop.f32.mrf.mxu1 }
 0x108   : > { %v3521_v24 = vpop.f32.mrf.mxu0  ;;  %v1440_v29 = vadd.f32 %v4148_v27, %v1386_v16  ;;  %1076 = vst [vmem:[#allocation2 + $0x139] sm:$0xff] %v1059_v25  ;;  %v1062_v49 = vmax.f32 %v1046_v26, 0.0  ;;  %v1044_v50 = vadd.f32 %v4051_v15, %v1028_v31  ;;  %v1033_v37 = vmul.f32 %v3552_v52, %v4037_v7  ;;  %v3766_v62 = vld [vmem:[%s3893_s29 + $0x58] sm:$0xff]  }
 0x109   : > { %786 = vst [vmem:[#allocation2 + $0x81] sm:$0xff] %v769_v36  ;;  %v774_v34 = vmax.f32 %v758_v17, 0.0  ;;  %v756_v39 = vadd.f32 %v4051_v15, %v734_v18  ;;  %v737_v43 = vmul.f32 %v3521_v24, %v4037_v7  ;;  %v1441_v57 = vadd.f32 %v4181_v10, %v1387_v32  ;;  %3671 = vmatmul.mubr.bf16.gmra.mxu1 %v3766_v62 }
 0x10a   : > { %v704_v45 = vpop.f32.mrf.mxu0  ;;  %v1493_v11 = vadd.f32 %v4080_v42, %v1440_v29  ;;  %1079 = vst [vmem:[#allocation2 + $0x159] sm:$0xff] %v1062_v49  ;;  %v1060_v17 = vmax.f32 %v1044_v50, 0.0  ;;  %v1049_v18 = vadd.f32 %v4051_v15, %v1033_v37  ;;  %v1031_v10 = vmul.f32 %v4037_v7, %v1004_v2  ;;  %v3553_v42 = vpop.f32.mrf.mxu1  ;;  %v4270_v37 = vld [vmem:[%s5261_s6] ss:$0 sm:$0xff]  ;;  %v4283_v2 = vld [vmem:[#allocation2 + $0x50] sm:$0xff] }
 0x10b   : > { %791 = vst [vmem:[#allocation2 + $0xc1] sm:$0xff] %v774_v34  ;;  %v772_v27 = vmax.f32 %v756_v39, 0.0  ;;  %v759_v0 = vadd.f32 %v4051_v15, %v737_v43  ;;  %v735_v1 = vmul.f32 %v4037_v7, %v704_v45  ;;  %v1494_v20 = vadd.f32 %v4109_v63, %v1441_v57  ;;  %v4260_v63 = vld [vmem:[%s5260_s5] ss:$0 sm:$0xff] }
 0x10c   : > { %v1530_v25 = vmul.f32 %v4235_v44, %v4240_v59  ;;  %v1531_v26 = vmul.f32 %v4235_v44, %v4242_v61  ;;  %1077 = vst [vmem:[#allocation2 + $0x141] sm:$0xff] %v1060_v17  ;;  %v1065_v31 = vmax.f32 %v1049_v18, 0.0  ;;  %v1047_v32 = vadd.f32 %v4051_v15, %v1031_v10  ;;  %v1007_v45 = vpop.f32.mrf.mxu1 }
 0x10d   : > { %789 = vst [vmem:[#allocation2 + $0xa9] sm:$0xff] %v772_v27  ;;  %v775_v16 = vmax.f32 %v759_v0, 0.0  ;;  %v757_v24 = vadd.f32 %v4051_v15, %v735_v1  ;;  %v1034_v34 = vmul.f32 %v3553_v42, %v4037_v7  ;;  %v1108_v39 = vmul.f32 %v4027_v3, %v4177_v4  ;;  %v4281_v1 = vld [vmem:[#allocation2 + $0x48] sm:$0xff] }
 0x10e   : > { %v1546_v52 = vadd.f32 %v1530_v25, %v1493_v11  ;;  %v1547_v29 = vadd.f32 %v1531_v26, %v1494_v20  ;;  %v1176_v49 = vadd.f32 %v4100_v58, %v4167_v54  ;;  %1082 = vst [vmem:[#allocation2 + $0x181] sm:$0xff] %v1065_v31  ;;  %v1063_v50 = vmax.f32 %v1047_v32, 0.0  ;;  %v4292_v20 = vld [vmem:[#allocation2 + $0x4a] sm:$0xff] }
 0x10f   : > { %792 = vst [vmem:[#allocation2 + $0xc9] sm:$0xff] %v775_v16  ;;  %v773_v43 = vmax.f32 %v757_v24, 0.0  ;;  %v1050_v57 = vadd.f32 %v4051_v15, %v1034_v34  ;;  %v1032_v62 = vmul.f32 %v4037_v7, %v1007_v45  ;;  %v1177_v4 = vadd.f32 %v4138_v22, %v1108_v39  ;;  %v4294_v16 = vld [vmem:[#allocation2 + $0x52] sm:$0xff] }
 0x110   : > { %v1568_v27 = vmul.f32 %v4260_v63, %v1546_v52  ;;  %v1569_v0 = vmul.f32 %v4260_v63, %v1547_v29  ;;  %v1213_v58 = vmul.f32 %v4046_v14, %v4190_v19  ;;  %v1214_v54 = vmul.f32 %v4046_v14, %v4199_v40  ;;  %1080 = vst [vmem:[#allocation2 + $0x169] sm:$0xff] %v1063_v50 }
 0x111   : > { %790 = vst [vmem:[#allocation2 + $0xb1] sm:$0xff] %v773_v43  ;;  %v1066_v11 = vmax.f32 %v1050_v57, 0.0  ;;  %v1048_v7 = vadd.f32 %v4051_v15, %v1032_v62  ;;  %v1267_v22 = vmul.f32 %v4128_v13, %v4164_v51  ;;  %v1372_v17 = vmul.f32 %v4204_v41, %v4240_v59 }
 0x112   : > { %v1590_v18 = vadd.f32 %v4270_v37, %v1568_v27  ;;  %v1591_v19 = vadd.f32 %v4270_v37, %v1569_v0  ;;  %v1229_v10 = vadd.f32 %v1213_v58, %v1176_v49  ;;  %v1230_v40 = vadd.f32 %v1214_v54, %v1177_v4  ;;  %v4323_v0 = vld [vmem:[#allocation2 + $0x60] sm:$0xff] }
 0x113   : > { %1083 = vst [vmem:[#allocation2 + $0x189] sm:$0xff] %v1066_v11  ;;  %v1064_v24 = vmax.f32 %v1048_v7, 0.0  ;;  %v1373_v15 = vmul.f32 %v4204_v41, %v4242_v61  ;;  %v1426_v25 = vmul.f32 %v4116_v5, %v4281_v1  ;;  %v1427_v26 = vmul.f32 %v4116_v5, %v4283_v2  ;;  %v3767_v54 = vld [vmem:[%s3893_s29 + $0x60] sm:$0xff]  }
 0x114   : > { %v1606_v42 = vmax.f32 %v1590_v18, 0.0  ;;  %v1607_v31 = vmax.f32 %v1591_v19, 0.0  ;;  %v1282_v32 = vadd.f32 %v4154_v35, %v1229_v10  ;;  %v1283_v34 = vadd.f32 %v1267_v22, %v1230_v40  ;;  %v4340_v19 = vld [vmem:[#allocation2 + $0x62] sm:$0xff]  ;;  %v4342_v10 = vld [vmem:[#allocation2 + $0x6a] sm:$0xff]  ;;  %3674 = vmatprep.mubr.bf16.mxu1 %v3767_v54 }
 0x115   : > { %1081 = vst [vmem:[#allocation2 + $0x171] sm:$0xff] %v1064_v24  ;;  %v1479_v39 = vmul.f32 %v4063_v28, %v4142_v23  ;;  %v1480_v43 = vmul.f32 %v4063_v28, %v4170_v55  ;;  %v1532_v52 = vmul.f32 %v4235_v44, %v4292_v20  ;;  %v1533_v29 = vmul.f32 %v4235_v44, %v4294_v16 }
 0x116   : > { %v1622_v45 = vpack.c.bf16 %v1607_v31, %v1606_v42  ;;  %v1335_v49 = vadd.f32 %v4085_v46, %v1282_v32  ;;  %v1336_v35 = vadd.f32 %v4120_v8, %v1283_v34  ;;  %v1109_v50 = vmul.f32 %v4027_v3, %v4135_v21 }
 0x117   : > { %v1110_v57 = vmul.f32 %v4027_v3, %v4164_v51  ;;  %v1163_v62 = vmul.f32 %v4032_v6, %v4090_v48  ;;  %v1215_v4 = vmul.f32 %v4046_v14, %v4240_v59  ;;  %v1216_v27 = vmul.f32 %v4046_v14, %v4242_v61  ;;  %v4328_v51 = vld [vmem:[#allocation2 + $0x68] sm:$0xff] }
 0x118   : > { %3570 = vmatprep.mubr.bf16.mxu0 %v1622_v45  ;;  %v1388_v46 = vadd.f32 %v1372_v17, %v1335_v49  ;;  %v1389_v8 = vadd.f32 %v1373_v15, %v1336_v35  ;;  %v1178_v58 = vadd.f32 %v4088_v47, %v1109_v50  ;;  %v1268_v21 = vmul.f32 %v4128_v13, %v4281_v1  ;;  %v3768_v48 = vld [vmem:[%s3893_s29 + $0x68] sm:$0xff]  }
 0x119   : > { %v1179_v11 = vadd.f32 %v1163_v62, %v1110_v57  ;;  %v1269_v59 = vmul.f32 %v4128_v13, %v4283_v2  ;;  %v1321_v61 = vmul.f32 %v4070_v33, %v4142_v23  ;;  %v1322_v7 = vmul.f32 %v4070_v33, %v4170_v55  ;;  %3675 = vmatmul.mubr.bf16.gmra.mxu1 %v3768_v48 }
 0x11a   : > { %v1442_v22 = vadd.f32 %v1426_v25, %v1388_v46  ;;  %v1443_v17 = vadd.f32 %v1427_v26, %v1389_v8  ;;  %v1231_v47 = vadd.f32 %v1215_v4, %v1178_v58  ;;  %v1374_v18 = vmul.f32 %v4204_v41, %v4292_v20 }
 0x11b   : > { %v1232_v40 = vadd.f32 %v1216_v27, %v1179_v11  ;;  %v1375_v24 = vmul.f32 %v4204_v41, %v4294_v16  ;;  %v1428_v15 = vmul.f32 %v4116_v5, %v4323_v0  ;;  %v1429_v25 = vmul.f32 %v4116_v5, %v4328_v51 }
 0x11c   : > { %v1495_v26 = vadd.f32 %v1479_v39, %v1442_v22  ;;  %v1496_v42 = vadd.f32 %v1480_v43, %v1443_v17  ;;  %v1284_v31 = vadd.f32 %v1268_v21, %v1231_v47  ;;  %v1481_v32 = vmul.f32 %v4063_v28, %v766_v9  ;;  %v1302_v21 = vld [vmem:[#allocation2 + $0x61] sm:$0xff]  ;;  %v4380_v47 = vld [vmem:[#allocation2 + $0x78] sm:$0xff] }
 0x11d   : > { %v1285_v34 = vadd.f32 %v1269_v59, %v1232_v40  ;;  %v1482_v45 = vmul.f32 %v4063_v28, %v4157_v38  ;;  %v1534_v49 = vmul.f32 %v4235_v44, %v4340_v19  ;;  %v1535_v35 = vmul.f32 %v4235_v44, %v4342_v10 }
 0x11e   : > { %v1548_v50 = vadd.f32 %v1532_v52, %v1495_v26  ;;  %v1549_v57 = vadd.f32 %v1533_v29, %v1496_v42  ;;  %v1337_v62 = vadd.f32 %v1321_v61, %v1284_v31  ;;  %v1111_v39 = vmul.f32 %v4027_v3, %v4281_v1  ;;  %v4384_v26 = vld [vmem:[#allocation2 + $0x80] sm:$0xff]  ;;  %v3747_v42 = vld [vmem:[%s5262_s7 + $0x30] sm:$0xff]  }
 0x11f   : > { %v1338_v43 = vadd.f32 %v1322_v7, %v1285_v34  ;;  %v1112_v60 = vmul.f32 %v4027_v3, %v4283_v2  ;;  %v1164_v9 = vmul.f32 %v4032_v6, %v4142_v23  ;;  %v1165_v4 = vmul.f32 %v4032_v6, %v4170_v55 }
 0x120   : > { %v1570_v27 = vmul.f32 %v4260_v63, %v1548_v50  ;;  %v1571_v46 = vmul.f32 %v4260_v63, %v1549_v57  ;;  %v1390_v52 = vadd.f32 %v1374_v18, %v1337_v62  ;;  %v1217_v29 = vmul.f32 %v4046_v14, %v4292_v20 }
 0x121   : > { %v1391_v8 = vadd.f32 %v1375_v24, %v1338_v43  ;;  %v1180_v1 = vadd.f32 %v1164_v9, %v1111_v39  ;;  %v1181_v58 = vadd.f32 %v1165_v4, %v1112_v60  ;;  %v1218_v2 = vmul.f32 %v4046_v14, %v4294_v16  ;;  %v4397_v39 = vld [vmem:[#allocation2 + $0x82] sm:$0xff] }
 0x122   : > { %v1592_v23 = vadd.f32 %v4270_v37, %v1570_v27  ;;  %v1593_v54 = vadd.f32 %v4270_v37, %v1571_v46  ;;  %v1444_v55 = vadd.f32 %v1428_v15, %v1390_v52  ;;  %v1270_v48 = vmul.f32 %v4128_v13, %v4323_v0  ;;  %v1146_v52 = vld [vmem:[#allocation2 + $0x69] sm:$0xff] }
 0x123   : > { %v1445_v11 = vadd.f32 %v1429_v25, %v1391_v8  ;;  %v1233_v59 = vadd.f32 %v1217_v29, %v1180_v1  ;;  %v1234_v61 = vadd.f32 %v1218_v2, %v1181_v58  ;;  %v1271_v20 = vmul.f32 %v4128_v13, %v4328_v51  ;;  %v1304_v2 = vld [vmem:[#allocation2 + $0x79] sm:$0xff] }
 0x124   : > { %v1608_v7 = vmax.f32 %v1592_v23, 0.0  ;;  %v1609_v22 = vmax.f32 %v1593_v54, 0.0  ;;  %v1497_v17 = vadd.f32 %v1481_v32, %v1444_v55  ;;  %v1323_v16 = vmul.f32 %v4070_v33, %v1302_v21 }
 0x125   : > { %v1498_v18 = vadd.f32 %v1482_v45, %v1445_v11  ;;  %v1286_v40 = vadd.f32 %v1270_v48, %v1233_v59  ;;  %v1287_v24 = vadd.f32 %v1271_v20, %v1234_v61  ;;  %v1324_v15 = vmul.f32 %v4070_v33, %v4157_v38  ;;  %v4393_v45 = vld [vmem:[#allocation2 + $0x7a] sm:$0xff] }
 0x126   : > { %v1623_v25 = vpack.c.bf16 %v1609_v22, %v1608_v7  ;;  %v1550_v31 = vadd.f32 %v1534_v49, %v1497_v17  ;;  %v1376_v32 = vmul.f32 %v4204_v41, %v4340_v19  ;;  %v1377_v34 = vmul.f32 %v4204_v41, %v4342_v10  ;;  %v3770_v11 = vld [vmem:[%s3893_s29 + $0x78] sm:$0xff]   ;;  %v1305_v7 = vld [vmem:[#allocation2 + $0x81] sm:$0xff] }
 0x127   : > { %v1551_v50 = vadd.f32 %v1535_v35, %v1498_v18  ;;  %v1339_v57 = vadd.f32 %v1323_v16, %v1286_v40  ;;  %v1340_v62 = vadd.f32 %v1324_v15, %v1287_v24  ;;  %v1430_v38 = vmul.f32 %v4116_v5, %v4380_v47  ;;  %v4439_v15 = vld [vmem:[#allocation2 + $0x90] sm:$0xff] }
 0x128   : > { %3571 = vmatmul.mubr.bf16.vlgmr.msra.gmra.mxu0 %v1623_v25  ;;  %v1572_v43 = vmul.f32 %v4260_v63, %v1550_v31  ;;  %v1431_v49 = vmul.f32 %v4116_v5, %v4384_v26  ;;  %v1483_v60 = vmul.f32 %v4063_v28, %v768_v30  ;;  %v1484_v35 = vmul.f32 %v4063_v28, %v769_v36  ;;  %v3749_v30 = vld [vmem:[%s5262_s7 + $0x28] sm:$0xff]   ;;  %v4441_v25 = vld [vmem:[#allocation2 + $0x98] sm:$0xff] }
 0x129   : > { %3619 = vmatpush3.bf16.msra.mxu0 %v3997_v53  ;;  %v1573_v9 = vmul.f32 %v4260_v63, %v1551_v50  ;;  %v1392_v4 = vadd.f32 %v1376_v32, %v1339_v57  ;;  %v1393_v27 = vadd.f32 %v1377_v34, %v1340_v62  ;;  %v1536_v46 = vmul.f32 %v4235_v44, %v4393_v45  ;;  %v4450_v57 = vld [vmem:[#allocation2 + $0x99] sm:$0xff] }
 0x12a   : > { %3620 = vmatprep.subr.bf16.mxu0 %v3747_v42  ;;  %v1594_v12 = vadd.f32 %v4270_v37, %v1572_v43  ;;  %v1537_v53 = vmul.f32 %v4235_v44, %v4397_v39  ;;  %v1113_v56 = vmul.f32 %v4027_v3, %v4323_v0  ;;  %v1114_v36 = vmul.f32 %v4027_v3, %v4328_v51  ;;  %v3769_v0 = vld [vmem:[%s3893_s29 + $0x70] sm:$0xff]  }
 0x12b   : > { %v1595_v29 = vadd.f32 %v4270_v37, %v1573_v9  ;;  %v1446_v8 = vadd.f32 %v1430_v38, %v1392_v4  ;;  %v1447_v1 = vadd.f32 %v1431_v49, %v1393_v27  ;;  %v1166_v58 = vmul.f32 %v4032_v6, %v1302_v21  ;;  %v3753_v21 = vld [vmem:[%s5262_s7 + $0x20] sm:$0xff]   ;;  %3678 = vmatprep.mubr.bf16.mxu1 %v3769_v0  ;;  %v4454_v49 = vld [vmem:[#allocation2 + $0x92] sm:$0xff] }
 0x12c   : > { %v1610_v23 = vmax.f32 %v1594_v12, 0.0  ;;  %v1167_v54 = vmul.f32 %v4032_v6, %v1146_v52  ;;  %v1219_v55 = vmul.f32 %v4046_v14, %v4340_v19  ;;  %v1220_v48 = vmul.f32 %v4046_v14, %v4342_v10  ;;  %3679 = vmatmul.mubr.bf16.gmra.mxu1 %v3770_v11 }
 0x12d   : > { %v1611_v59 = vmax.f32 %v1595_v29, 0.0  ;;  %3621 = vmatpush3.bf16.msra.mxu0 %v3747_v42  ;;  %v1499_v51 = vadd.f32 %v1483_v60, %v1446_v8  ;;  %v1500_v61 = vadd.f32 %v1484_v35, %v1447_v1  ;;  %v1182_v20 = vadd.f32 %v1166_v58, %v1113_v56  ;;  %v4443_v42 = vld [vmem:[#allocation2 + $0x91] sm:$0xff]  ;;  %v4456_v60 = vld [vmem:[#allocation2 + $0x9a] sm:$0xff] }
 0x12e   : > { %3622 = vmatprep.subr.bf16.mxu0 %v3749_v30  ;;  %v1183_v22 = vadd.f32 %v1167_v54, %v1114_v36  ;;  %v1272_v19 = vmul.f32 %v4128_v13, %v4380_v47  ;;  %v1273_v10 = vmul.f32 %v4128_v13, %v4384_v26  ;;  %v1325_v17 = vmul.f32 %v4070_v33, %v1304_v2 }
 0x12f   : > { %v1624_v16 = vpack.c.bf16 %v1611_v59, %v1610_v23  ;;  %v1552_v18 = vadd.f32 %v1536_v46, %v1499_v51  ;;  %v1553_v40 = vadd.f32 %v1537_v53, %v1500_v61  ;;  %v1235_v24 = vadd.f32 %v1219_v55, %v1182_v20  ;;  %v3755_v46 = vld [vmem:[%s5262_s7 + $0x18] sm:$0xff]  }
 0x130   : > { %v1236_v31 = vadd.f32 %v1220_v48, %v1183_v22  ;;  %v1326_v32 = vmul.f32 %v4070_v33, %v1305_v7  ;;  %v1378_v34 = vmul.f32 %v4204_v41, %v4393_v45  ;;  %v1379_v50 = vmul.f32 %v4204_v41, %v4397_v39  ;;  %v4492_v22 = vld [vmem:[#allocation2 + $0xa8] sm:$0xff] }
 0x131   : > { %3574 = vmatprep.mubr.bf16.mxu0 %v1624_v16  ;;  %v1574_v62 = vmul.f32 %v4260_v63, %v1552_v18  ;;  %v1575_v38 = vmul.f32 %v4260_v63, %v1553_v40  ;;  %3623 = vmatpush3.bf16.msra.mxu0 %v3749_v30  ;;  %v1288_v43 = vadd.f32 %v1272_v19, %v1235_v24  ;;  %v4496_v19 = vld [vmem:[#allocation2 + $0xa9] sm:$0xff]  ;;  %v4504_v18 = vld [vmem:[#allocation2 + $0xb1] sm:$0xff] }
 0x132   : > { %3624 = vmatprep.subr.bf16.mxu0 %v3753_v21  ;;  %v1289_v35 = vadd.f32 %v1273_v10, %v1236_v31  ;;  %v1432_v9 = vmul.f32 %v4116_v5, %v4439_v15  ;;  %v1433_v4 = vmul.f32 %v4116_v5, %v4441_v25  ;;  %v1485_v27 = vmul.f32 %v4063_v28, %v4443_v42 }
 0x133   : > { %v1596_v52 = vadd.f32 %v4270_v37, %v1574_v62  ;;  %v1597_v12 = vadd.f32 %v4270_v37, %v1575_v38  ;;  %v1341_v30 = vadd.f32 %v1325_v17, %v1288_v43  ;;  %v1486_v53 = vmul.f32 %v4063_v28, %v4450_v57 }
 0x134   : > { %v1342_v56 = vadd.f32 %v1326_v32, %v1289_v35  ;;  %v1538_v36 = vmul.f32 %v4235_v44, %v4454_v49  ;;  %v1539_v29 = vmul.f32 %v4235_v44, %v4456_v60  ;;  %v1115_v8 = vmul.f32 %v4027_v3, %v4380_v47 }
 0x135   : > { %v1612_v1 = vmax.f32 %v1596_v52, 0.0  ;;  %v1613_v58 = vmax.f32 %v1597_v12, 0.0  ;;  %v1394_v23 = vadd.f32 %v1378_v34, %v1341_v30  ;;  %3625 = vmatpush3.bf16.msra.mxu0 %v3753_v21  ;;  %v1116_v54 = vmul.f32 %v4027_v3, %v4384_v26  ;;  %v3759_v26 = vld [vmem:[%s5262_s7 + $0x10] sm:$0xff]  }
 0x136   : > { %v1395_v55 = vadd.f32 %v1379_v50, %v1342_v56  ;;  %3626 = vmatprep.subr.bf16.mxu0 %v3755_v46  ;;  %v1168_v48 = vmul.f32 %v4032_v6, %v1304_v2  ;;  %v1169_v0 = vmul.f32 %v4032_v6, %v1305_v7  ;;  %v1221_v11 = vmul.f32 %v4046_v14, %v4393_v45  ;;  %v4494_v45 = vld [vmem:[#allocation2 + $0xb0] sm:$0xff] }
 0x137   : > { %v1625_v59 = vpack.c.bf16 %v1613_v58, %v1612_v1  ;;  %v1448_v51 = vadd.f32 %v1432_v9, %v1394_v23  ;;  %v1222_v47 = vmul.f32 %v4046_v14, %v4397_v39  ;;  %v1274_v61 = vmul.f32 %v4128_v13, %v4439_v15  ;;  %v4508_v34 = vld [vmem:[#allocation2 + $0xaa] sm:$0xff]  ;;  %v4510_v50 = vld [vmem:[#allocation2 + $0xb2] sm:$0xff] }
 0x138   : > { %v1449_v20 = vadd.f32 %v1433_v4, %v1395_v55  ;;  %v1184_v21 = vadd.f32 %v1168_v48, %v1115_v8  ;;  %v1185_v2 = vadd.f32 %v1169_v0, %v1116_v54  ;;  %v1275_v7 = vmul.f32 %v4128_v13, %v4441_v25  ;;  %v3761_v9 = vld [vmem:[%s5262_s7 + $0x8] sm:$0xff]  }
 0x139   : > { %3575 = vmatmul.mubr.bf16.gmra.mxu0 %v1625_v59  ;;  %v1501_v39 = vadd.f32 %v1485_v27, %v1448_v51  ;;  %v1327_v10 = vmul.f32 %v4070_v33, %v4443_v42  ;;  %v1328_v17 = vmul.f32 %v4070_v33, %v4450_v57  ;;  %v1380_v16 = vmul.f32 %v4204_v41, %v4454_v49 }
 0x13a   : > { %v1502_v40 = vadd.f32 %v1486_v53, %v1449_v20  ;;  %v1237_v24 = vadd.f32 %v1221_v11, %v1184_v21  ;;  %v1238_v31 = vadd.f32 %v1222_v47, %v1185_v2  ;;  %v1381_v32 = vmul.f32 %v4204_v41, %v4456_v60  ;;  %3627 = vmatpush3.bf16.msra.mxu0 %v3755_v46  ;;  %v4556_v21 = vld [vmem:[#allocation2 + $0xc8] sm:$0xff] }
 0x13b   : > { %v1554_v62 = vadd.f32 %v1538_v36, %v1501_v39  ;;  %v1434_v38 = vmul.f32 %v4116_v5, %v4492_v22  ;;  %v1435_v43 = vmul.f32 %v4116_v5, %v4494_v45  ;;  %v1487_v35 = vmul.f32 %v4063_v28, %v4496_v19  ;;  %3628 = vmatprep.subr.bf16.mxu0 %v3759_v26  ;;  %v4558_v2 = vld [vmem:[#allocation2 + $0xc1] sm:$0xff] }
 0x13c   : > { %v1555_v4 = vadd.f32 %v1539_v29, %v1502_v40  ;;  %v1290_v27 = vadd.f32 %v1274_v61, %v1237_v24  ;;  %v1291_v52 = vadd.f32 %v1275_v7, %v1238_v31  ;;  %v1488_v46 = vmul.f32 %v4063_v28, %v4504_v18  ;;  %v4550_v61 = vld [vmem:[#allocation2 + $0xc0] sm:$0xff] }
 0x13d   : > { %v1576_v12 = vmul.f32 %v4260_v63, %v1554_v62  ;;  %v1540_v30 = vmul.f32 %v4235_v44, %v4508_v34  ;;  %v1541_v53 = vmul.f32 %v4235_v44, %v4510_v50  ;;  %v1117_v56 = vmul.f32 %v4027_v3, %v4439_v15  ;;  %v3764_v15 = vld [vmem:[%s5262_s7] sm:$0xff]   ;;  %v4570_v62 = vld [vmem:[#allocation2 + $0xca] sm:$0xff] }
 0x13e   : > { %v1577_v36 = vmul.f32 %v4260_v63, %v1555_v4  ;;  %v1343_v8 = vadd.f32 %v1327_v10, %v1290_v27  ;;  %v1344_v29 = vadd.f32 %v1328_v17, %v1291_v52  ;;  %v1118_v1 = vmul.f32 %v4027_v3, %v4441_v25  ;;  %3629 = vmatpush3.bf16.msra.mxu0 %v3759_v26  ;;  %v4564_v40 = vld [vmem:[#allocation2 + $0xc2] sm:$0xff] }
 0x13f   : > { %v1598_v58 = vadd.f32 %v4270_v37, %v1576_v12  ;;  %v1170_v23 = vmul.f32 %v4032_v6, %v4443_v42  ;;  %v1171_v54 = vmul.f32 %v4032_v6, %v4450_v57  ;;  %v1223_v55 = vmul.f32 %v4046_v14, %v4454_v49  ;;  %3630 = vmatprep.subr.bf16.mxu0 %v3761_v9 }
 0x140   : > { %v1599_v48 = vadd.f32 %v4270_v37, %v1577_v36  ;;  %v1396_v3 = vadd.f32 %v1380_v16, %v1343_v8  ;;  %v1397_v25 = vadd.f32 %v1381_v32, %v1344_v29  ;;  %v1224_v0 = vmul.f32 %v4046_v14, %v4456_v60  ;;  %v4562_v16 = vld [vmem:[#allocation2 + $0xc9] sm:$0xff] }
 0x141   : > { %v1614_v11 = vmax.f32 %v1598_v58, 0.0  ;;  %v1186_v42 = vadd.f32 %v1170_v23, %v1117_v56  ;;  %v1187_v59 = vadd.f32 %v1171_v54, %v1118_v1  ;;  %v1276_v6 = vmul.f32 %v4128_v13, %v4492_v22  ;;  %v3771_v56 = vld [vmem:[%s5259_s4] ss:$0 sm:$0xff]  ;;  %v3772_v1 = vld [vmem:[%s5259_s4 + $0x1] ss:$0 sm:$0xff] }
 0x142   : > { %v1615_v57 = vmax.f32 %v1599_v48, 0.0  ;;  %v1450_v49 = vadd.f32 %v1434_v38, %v1396_v3  ;;  %v1451_v51 = vadd.f32 %v1435_v43, %v1397_v25  ;;  %v1277_v47 = vmul.f32 %v4128_v13, %v4494_v45  ;;  %3631 = vmatpush3.bf16.msra.mxu0 %v3761_v9 }
 0x143   : > { %v1239_v26 = vadd.f32 %v1223_v55, %v1186_v42  ;;  %v1240_v20 = vadd.f32 %v1224_v0, %v1187_v59  ;;  %v1329_v14 = vmul.f32 %v4070_v33, %v4496_v19  ;;  %v1330_v60 = vmul.f32 %v4070_v33, %v4504_v18  ;;  %3632 = vmatprep.subr.bf16.mxu0 %v3764_v15 }
 0x144   : > { %v1626_v7 = vpack.c.bf16 %v1615_v57, %v1614_v11  ;;  %v1503_v39 = vadd.f32 %v1487_v35, %v1450_v49  ;;  %v1504_v10 = vadd.f32 %v1488_v46, %v1451_v51  ;;  %v1382_v17 = vmul.f32 %v4204_v41, %v4508_v34 }
 0x145   : > { %v1292_v24 = vadd.f32 %v1276_v6, %v1239_v26  ;;  %v1293_v31 = vadd.f32 %v1277_v47, %v1240_v20  ;;  %v1383_v33 = vmul.f32 %v4204_v41, %v4510_v50  ;;  %v1436_v32 = vmul.f32 %v4116_v5, %v4550_v61 }
 0x146   : > { %3578 = vmatprep.mubr.bf16.mxu0 %v1626_v7  ;;  %v1556_v38 = vadd.f32 %v1540_v30, %v1503_v39  ;;  %v1557_v43 = vadd.f32 %v1541_v53, %v1504_v10  ;;  %v1437_v35 = vmul.f32 %v4116_v5, %v4556_v21  ;;  %v1489_v9 = vmul.f32 %v4063_v28, %v4558_v2  ;;  %v4612_v7 = vld [vmem:[#allocation2 + $0xd8] sm:$0xff]  ;;  %v4614_v39 = vld [vmem:[#allocation2 + $0xe0] sm:$0xff] }
 0x147   : > { %v1345_v4 = vadd.f32 %v1329_v14, %v1292_v24  ;;  %v1346_v27 = vadd.f32 %v1330_v60, %v1293_v31  ;;  %v1490_v52 = vmul.f32 %v4063_v28, %v4562_v16  ;;  %v1542_v46 = vmul.f32 %v4235_v44, %v4564_v40  ;;  %3633 = vmatpush3.bf16.msra.mxu0 %v3764_v15  ;;  %v4622_v31 = vld [vmem:[#allocation2 + $0xd9] sm:$0xff] }
 0x148   : > { %v1578_v12 = vmul.f32 %v4260_v63, %v1556_v38  ;;  %v1579_v30 = vmul.f32 %v4260_v63, %v1557_v43  ;;  %v1543_v53 = vmul.f32 %v4235_v44, %v4570_v62  ;;  %v1119_v36 = vmul.f32 %v3771_v56, %v4492_v22  ;;  %v3773_v22 = vld [vmem:[%s5259_s4 + $0x2] ss:$0 sm:$0xff] }
 0x149   : > { %v1398_v8 = vadd.f32 %v1382_v17, %v1345_v4  ;;  %v1399_v29 = vadd.f32 %v1383_v33, %v1346_v27  ;;  %v1120_v28 = vmul.f32 %v3771_v56, %v4494_v45  ;;  %v1172_v58 = vmul.f32 %v3772_v1, %v4496_v19  ;;  %v4627_v33 = vld [vmem:[%s5259_s4] ss:$0 sm:$0xff]  ;;  %v4644_v27 = vld [vmem:[#allocation2 + $0xe2] sm:$0xff] }
 0x14a   : > { %v1600_v23 = vadd.f32 %v4270_v37, %v1578_v12  ;;  %v1601_v54 = vadd.f32 %v4270_v37, %v1579_v30  ;;  %v1173_v55 = vmul.f32 %v3772_v1, %v4504_v18  ;;  %v1225_v15 = vmul.f32 %v3773_v22, %v4508_v34  ;;  %v3774_v34 = vld [vmem:[%s5259_s4 + $0x4] ss:$0 sm:$0xff]  ;;  %v4642_v4 = vld [vmem:[#allocation2 + $0xda] sm:$0xff] }
 0x14b   : > { %v1452_v48 = vadd.f32 %v1436_v32, %v1398_v8  ;;  %v1453_v45 = vadd.f32 %v1437_v35, %v1399_v29  ;;  %v1188_v3 = vadd.f32 %v1172_v58, %v1119_v36  ;;  %v1226_v25 = vmul.f32 %v3773_v22, %v4510_v50  ;;  %v4632_v32 = vld [vmem:[%s5259_s4 + $0x1] ss:$0 sm:$0xff] }
 0x14c   : > { %v1616_v0 = vmax.f32 %v1600_v23, 0.0  ;;  %v1617_v11 = vmax.f32 %v1601_v54, 0.0  ;;  %v1189_v19 = vadd.f32 %v1173_v55, %v1120_v28  ;;  %v1278_v42 = vmul.f32 %v4128_v13, %v4550_v61  ;;  %v4636_v35 = vld [vmem:[#allocation2 + $0xe1] sm:$0xff] }
 0x14d   : > { %v1505_v59 = vadd.f32 %v1489_v9, %v1452_v48  ;;  %v1506_v6 = vadd.f32 %v1490_v52, %v1453_v45  ;;  %v1241_v18 = vadd.f32 %v1225_v15, %v1188_v3  ;;  %v1279_v57 = vmul.f32 %v4128_v13, %v4556_v21  ;;  %v4678_v48 = vld [vmem:[%s5259_s4 + $0x5] ss:$0 sm:$0xff] }
 0x14e   : > { %v1627_v49 = vpack.c.bf16 %v1617_v11, %v1616_v0  ;;  %v1242_v51 = vadd.f32 %v1226_v25, %v1189_v19  ;;  %v1331_v50 = vmul.f32 %v3774_v34, %v4558_v2  ;;  %v1332_v47 = vmul.f32 %v3774_v34, %v4562_v16  ;;  %v4692_v0 = vld [vmem:[%s5259_s4 + $0x6] ss:$0 sm:$0xff]  ;;  %v4707_v34 = vld [vmem:[#allocation2 + $0xf0] sm:$0xff] }
 0x14f   : > { %v1558_v26 = vadd.f32 %v1542_v46, %v1505_v59  ;;  %v1559_v20 = vadd.f32 %v1543_v53, %v1506_v6  ;;  %v1294_v14 = vadd.f32 %v1278_v42, %v1241_v18  ;;  %v1384_v60 = vmul.f32 %v4204_v41, %v4564_v40  ;;  %v4699_v6 = vld [vmem:[%s5259_s4 + $0x7] ss:$0 sm:$0xff] }
 0x150   : > { %3579 = vmatmul.mubr.bf16.gmra.mxu0 %v1627_v49  ;;  %v1295_v13 = vadd.f32 %v1279_v57, %v1242_v51  ;;  %v1385_v10 = vmul.f32 %v4204_v41, %v4570_v62  ;;  %v1438_v17 = vmul.f32 %v4116_v5, %v4612_v7  ;;  %v1439_v24 = vmul.f32 %v4116_v5, %v4614_v39  ;;  %v3775_v5 = vld [vmem:[%s5259_s4 + $0x7] ss:$0 sm:$0xff] }
 0x151   : > { %v1580_v41 = vmul.f32 %v4260_v63, %v1558_v26  ;;  %v1581_v38 = vmul.f32 %v4260_v63, %v1559_v20  ;;  %v1347_v43 = vadd.f32 %v1331_v50, %v1294_v14  ;;  %v1491_v9 = vmul.f32 %v3775_v5, %v4622_v31  ;;  %v4712_v50 = vld [vmem:[%s5259_s4 + $0x8] ss:$0 sm:$0xff]  ;;  %v4714_v14 = vld [vmem:[#allocation2 + $0xf8] sm:$0xff] }
 0x152   : > { %v1348_v52 = vadd.f32 %v1332_v47, %v1295_v13  ;;  %v1492_v46 = vmul.f32 %v3775_v5, %v4636_v35  ;;  %v1544_v12 = vmul.f32 %v4235_v44, %v4642_v4  ;;  %v1545_v30 = vmul.f32 %v4235_v44, %v4644_v27  ;;  %v4664_v44 = vld [vmem:[%s5259_s4 + $0x2] ss:$0 sm:$0xff]  ;;  %v4718_v13 = vld [vmem:[#allocation2 + $0xf1] sm:$0xff] }
 0x153   : > { %v1602_v53 = vadd.f32 %v4270_v37, %v1580_v41  ;;  %v1603_v56 = vadd.f32 %v4270_v37, %v1581_v38  ;;  %v1400_v36 = vadd.f32 %v1384_v60, %v1347_v43  ;;  %v2160_v8 = vmul.f32 %v4627_v33, %v4550_v61  ;;  %v4729_v43 = vld [vmem:[#allocation2 + $0xf2] sm:$0xff] }
 0x154   : > { %v1401_v29 = vadd.f32 %v1385_v10, %v1348_v52  ;;  %v2161_v28 = vmul.f32 %v4627_v33, %v4556_v21  ;;  %v2213_v1 = vmul.f32 %v4632_v32, %v4558_v2  ;;  %v2214_v58 = vmul.f32 %v4632_v32, %v4562_v16  ;;  %v4673_v16 = vld [vmem:[%s5259_s4 + $0x3] ss:$0 sm:$0xff]  ;;  %v4720_v10 = vld [vmem:[#allocation2 + $0xf9] sm:$0xff] }
 0x155   : > { %v1618_v23 = vmax.f32 %v1602_v53, 0.0  ;;  %v1619_v54 = vmax.f32 %v1603_v56, 0.0  ;;  %v1454_v55 = vadd.f32 %v1438_v17, %v1400_v36  ;;  %v2266_v61 = vmul.f32 %v4664_v44, %v4564_v40 }
 0x156   : > { %v1455_v22 = vadd.f32 %v1439_v24, %v1401_v29  ;;  %v2229_v15 = vadd.f32 %v2213_v1, %v2160_v8  ;;  %v2230_v21 = vadd.f32 %v2214_v58, %v2161_v28  ;;  %v2267_v2 = vmul.f32 %v4664_v44, %v4570_v62  ;;  %v4687_v62 = vld [vmem:[%s5259_s4 + $0x4] ss:$0 sm:$0xff] }
 0x157   : > { %v1628_v45 = vpack.c.bf16 %v1619_v54, %v1618_v23  ;;  %v1507_v3 = vadd.f32 %v1491_v9, %v1454_v55  ;;  %v2319_v40 = vmul.f32 %v4673_v16, %v4612_v7  ;;  %v2320_v25 = vmul.f32 %v4673_v16, %v4614_v39 }
 0x158   : > { %v1508_v11 = vadd.f32 %v1492_v46, %v1455_v22  ;;  %v2282_v19 = vadd.f32 %v2266_v61, %v2229_v15  ;;  %v2283_v42 = vadd.f32 %v2267_v2, %v2230_v21  ;;  %v2372_v59 = vmul.f32 %v4687_v62, %v4622_v31  ;;  %v2565_v46 = vld [vmem:[#allocation2 + $0xfa] sm:$0xff] }
 0x159   : > { %3582 = vmatprep.mubr.bf16.mxu0 %v1628_v45  ;;  %v1560_v18 = vadd.f32 %v1544_v12, %v1507_v3  ;;  %v2373_v57 = vmul.f32 %v4687_v62, %v4636_v35  ;;  %v2425_v49 = vmul.f32 %v4678_v48, %v4642_v4  ;;  %v2426_v51 = vmul.f32 %v4678_v48, %v4644_v27 }
 0x15a   : > { %v1561_v47 = vadd.f32 %v1545_v30, %v1508_v11  ;;  %v2335_v26 = vadd.f32 %v2319_v40, %v2282_v19  ;;  %v2336_v20 = vadd.f32 %v2320_v25, %v2283_v42  ;;  %v2479_v60 = vmul.f32 %v4692_v0, %v4707_v34  ;;  %v4760_v19 = vld [vmem:[#allocation2 + $0x108] sm:$0xff] }
 0x15b   : > { %v1582_v17 = vmul.f32 %v4260_v63, %v1560_v18  ;;  %v2480_v24 = vmul.f32 %v4692_v0, %v4714_v14  ;;  %v2532_v41 = vmul.f32 %v4699_v6, %v4718_v13  ;;  %v2533_v38 = vmul.f32 %v4699_v6, %v4720_v10 }
 0x15c   : > { %v1583_v5 = vmul.f32 %v4260_v63, %v1561_v47  ;;  %v2388_v9 = vadd.f32 %v2372_v59, %v2335_v26  ;;  %v2389_v52 = vadd.f32 %v2373_v57, %v2336_v20  ;;  %v2585_v12 = vmul.f32 %v4712_v50, %v4729_v43  ;;  %v4762_v57 = vld [vmem:[#allocation2 + $0x110] sm:$0xff] }
 0x15d   : > { %v1604_v30 = vadd.f32 %v4270_v37, %v1582_v17  ;;  %v2586_v53 = vmul.f32 %v4712_v50, %v2565_v46  ;;  %v2162_v56 = vmul.f32 %v4627_v33, %v4612_v7  ;;  %v2163_v36 = vmul.f32 %v4627_v33, %v4614_v39  ;;  %v4768_v47 = vld [vmem:[#allocation2 + $0x111] sm:$0xff] }
 0x15e   : > { %v1605_v8 = vadd.f32 %v4270_v37, %v1583_v5  ;;  %v2441_v29 = vadd.f32 %v2425_v49, %v2388_v9  ;;  %v2442_v28 = vadd.f32 %v2426_v51, %v2389_v52  ;;  %v2215_v1 = vmul.f32 %v4632_v32, %v4622_v31  ;;  %v4766_v51 = vld [vmem:[#allocation2 + $0x109] sm:$0xff]  ;;  %v4780_v9 = vld [vmem:[#allocation2 + $0x112] sm:$0xff] }
 0x15f   : > { %v1620_v58 = vmax.f32 %v1604_v30, 0.0  ;;  %v2216_v23 = vmul.f32 %v4632_v32, %v4636_v35  ;;  %v2268_v54 = vmul.f32 %v4664_v44, %v4642_v4  ;;  %v2269_v7 = vmul.f32 %v4664_v44, %v4644_v27 }
 0x160   : > { %v1621_v55 = vmax.f32 %v1605_v8, 0.0  ;;  %v2495_v61 = vadd.f32 %v2479_v60, %v2441_v29  ;;  %v2496_v39 = vadd.f32 %v2480_v24, %v2442_v28  ;;  %v2231_v22 = vadd.f32 %v2215_v1, %v2162_v56  ;;  %v4776_v24 = vld [vmem:[#allocation2 + $0x10a] sm:$0xff] }
 0x161   : > { %v2232_v15 = vadd.f32 %v2216_v23, %v2163_v36  ;;  %v2321_v21 = vmul.f32 %v4673_v16, %v4707_v34  ;;  %v2322_v31 = vmul.f32 %v4673_v16, %v4714_v14  ;;  %v2374_v35 = vmul.f32 %v4687_v62, %v4718_v13 }
 0x162   : > { %v1629_v2 = vpack.c.bf16 %v1621_v55, %v1620_v58  ;;  %v2548_v45 = vadd.f32 %v2532_v41, %v2495_v61  ;;  %v2549_v4 = vadd.f32 %v2533_v38, %v2496_v39  ;;  %v2284_v3 = vadd.f32 %v2268_v54, %v2231_v22 }
 0x163   : > { %v2285_v40 = vadd.f32 %v2269_v7, %v2232_v15  ;;  %v2375_v27 = vmul.f32 %v4687_v62, %v4720_v10  ;;  %v2427_v25 = vmul.f32 %v4678_v48, %v4729_v43  ;;  %v2428_v11 = vmul.f32 %v4678_v48, %v2565_v46 }
 0x164   : > { %3583 = vmatmul.mubr.bf16.gmra.mxu0 %v1629_v2  ;;  %v2601_v42 = vadd.f32 %v2585_v12, %v2548_v45  ;;  %v2602_v59 = vadd.f32 %v2586_v53, %v2549_v4  ;;  %v2337_v18 = vadd.f32 %v2321_v21, %v2284_v3  ;;  %v2481_v49 = vmul.f32 %v4692_v0, %v4760_v19  ;;  %v4809_v45 = vld [vmem:[#allocation2 + $0x120] sm:$0xff] }
 0x165   : > { %v2338_v26 = vadd.f32 %v2322_v31, %v2285_v40  ;;  %v2482_v20 = vmul.f32 %v4692_v0, %v4762_v57  ;;  %v2534_v60 = vmul.f32 %v4699_v6, %v4766_v51  ;;  %v2535_v17 = vmul.f32 %v4699_v6, %v4768_v47 }
 0x166   : > { %v2617_v41 = vmul.f32 %v4260_v63, %v2601_v42  ;;  %v2618_v38 = vmul.f32 %v4260_v63, %v2602_v59  ;;  %v2390_v5 = vadd.f32 %v2374_v35, %v2337_v18  ;;  %v2587_v52 = vmul.f32 %v4712_v50, %v4776_v24 }
 0x167   : > { %v2391_v12 = vadd.f32 %v2375_v27, %v2338_v26  ;;  %v2588_v30 = vmul.f32 %v4712_v50, %v4780_v9  ;;  %v2164_v53 = vmul.f32 %v4627_v33, %v4707_v34  ;;  %v2165_v56 = vmul.f32 %v4627_v33, %v4714_v14  ;;  %v4813_v27 = vld [vmem:[#allocation2 + $0x128] sm:$0xff] }
 0x168   : > { %v2633_v36 = vadd.f32 %v4270_v37, %v2617_v41  ;;  %v2634_v8 = vadd.f32 %v4270_v37, %v2618_v38  ;;  %v2443_v29 = vadd.f32 %v2427_v25, %v2390_v5  ;;  %v2217_v28 = vmul.f32 %v4632_v32, %v4718_v13  ;;  %v4830_v38 = vld [vmem:[#allocation2 + $0x12a] sm:$0xff] }
 0x169   : > { %v2444_v1 = vadd.f32 %v2428_v11, %v2391_v12  ;;  %v2218_v58 = vmul.f32 %v4632_v32, %v4720_v10  ;;  %v2270_v23 = vmul.f32 %v4664_v44, %v4729_v43  ;;  %v2271_v34 = vmul.f32 %v4664_v44, %v2565_v46  ;;  %v4817_v11 = vld [vmem:[#allocation2 + $0x121] sm:$0xff] }
 0x16a   : > { %v2649_v54 = vmax.f32 %v2633_v36, 0.0  ;;  %v2650_v7 = vmax.f32 %v2634_v8, 0.0  ;;  %v2497_v14 = vadd.f32 %v2481_v49, %v2443_v29  ;;  %v2233_v55 = vadd.f32 %v2217_v28, %v2164_v53  ;;  %v4821_v49 = vld [vmem:[#allocation2 + $0x129] sm:$0xff] }
 0x16b   : > { %v2498_v61 = vadd.f32 %v2482_v20, %v2444_v1  ;;  %v2234_v39 = vadd.f32 %v2218_v58, %v2165_v56  ;;  %v2323_v22 = vmul.f32 %v4673_v16, %v4760_v19  ;;  %v2324_v13 = vmul.f32 %v4673_v16, %v4762_v57  ;;  %v4825_v20 = vld [vmem:[#allocation2 + $0x122] sm:$0xff] }
 0x16c   : > { %v2665_v15 = vpack.c.bf16 %v2650_v7, %v2649_v54  ;;  %v2550_v21 = vadd.f32 %v2534_v60, %v2497_v14  ;;  %v2286_v10 = vadd.f32 %v2270_v23, %v2233_v55  ;;  %v2376_v43 = vmul.f32 %v4687_v62, %v4766_v51 }
 0x16d   : > { %v2551_v31 = vadd.f32 %v2535_v17, %v2498_v61  ;;  %v2287_v46 = vadd.f32 %v2271_v34, %v2234_v39  ;;  %v2377_v35 = vmul.f32 %v4687_v62, %v4768_v47  ;;  %v2429_v2 = vmul.f32 %v4678_v48, %v4776_v24 }
 0x16e   : > { %3634 = vmatprep.mubr.bf16.mxu0 %v2665_v15  ;;  %v2603_v4 = vadd.f32 %v2587_v52, %v2550_v21  ;;  %v2339_v3 = vadd.f32 %v2323_v22, %v2286_v10  ;;  %v2430_v40 = vmul.f32 %v4678_v48, %v4780_v9  ;;  %v2483_v25 = vmul.f32 %v4692_v0, %v4809_v45  ;;  %v4837_v52 = vld [vmem:[%s5260_s5] ss:$0 sm:$0xff] }
 0x16f   : > { %v2604_v42 = vadd.f32 %v2588_v30, %v2551_v31  ;;  %v2340_v59 = vadd.f32 %v2324_v13, %v2287_v46  ;;  %v2484_v18 = vmul.f32 %v4692_v0, %v4813_v27  ;;  %v2536_v26 = vmul.f32 %v4699_v6, %v4817_v11  ;;  %v4868_v31 = vld [vmem:[#allocation2 + $0x138] sm:$0xff]  ;;  %v4870_v46 = vld [vmem:[#allocation2 + $0x140] sm:$0xff] }
 0x170   : > { %v2619_v60 = vmul.f32 %v4260_v63, %v2603_v4  ;;  %v2392_v17 = vadd.f32 %v2376_v43, %v2339_v3  ;;  %v2537_v41 = vmul.f32 %v4699_v6, %v4821_v49  ;;  %v2589_v5 = vmul.f32 %v4712_v50, %v4825_v20 }
 0x171   : > { %v2620_v12 = vmul.f32 %v4837_v52, %v2604_v42  ;;  %v2393_v30 = vadd.f32 %v2377_v35, %v2340_v59  ;;  %v2590_v63 = vmul.f32 %v4712_v50, %v4830_v38  ;;  %v2166_v53 = vmul.f32 %v4627_v33, %v4760_v19 }
 0x172   : > { %v2635_v56 = vadd.f32 %v4270_v37, %v2619_v60  ;;  %v2445_v36 = vadd.f32 %v2429_v2, %v2392_v17  ;;  %v2167_v8 = vmul.f32 %v4627_v33, %v4762_v57  ;;  %v2219_v29 = vmul.f32 %v4632_v32, %v4766_v51  ;;  %v4885_v60 = vld [vmem:[#allocation2 + $0x13a] sm:$0xff]  ;;  %v4887_v17 = vld [vmem:[#allocation2 + $0x142] sm:$0xff] }
 0x173   : > { %v2636_v28 = vadd.f32 %v4270_v37, %v2620_v12  ;;  %v2446_v1 = vadd.f32 %v2430_v40, %v2393_v30  ;;  %v2220_v58 = vmul.f32 %v4632_v32, %v4768_v47  ;;  %v2272_v23 = vmul.f32 %v4664_v44, %v4776_v24  ;;  %v4876_v40 = vld [vmem:[#allocation2 + $0x139] sm:$0xff] }
 0x174   : > { %v2651_v34 = vmax.f32 %v2635_v56, 0.0  ;;  %v2499_v19 = vadd.f32 %v2483_v25, %v2445_v36  ;;  %v2235_v54 = vadd.f32 %v2219_v29, %v2166_v53  ;;  %v2273_v7 = vmul.f32 %v4664_v44, %v4780_v9  ;;  %v4878_v25 = vld [vmem:[#allocation2 + $0x141] sm:$0xff] }
 0x175   : > { %v2652_v14 = vmax.f32 %v2636_v28, 0.0  ;;  %v2500_v57 = vadd.f32 %v2484_v18, %v2446_v1  ;;  %v2236_v55 = vadd.f32 %v2220_v58, %v2167_v8  ;;  %v2325_v51 = vmul.f32 %v4673_v16, %v4809_v45 }
 0x176   : > { %v2552_v37 = vadd.f32 %v2536_v26, %v2499_v19  ;;  %v2288_v61 = vadd.f32 %v2272_v23, %v2235_v54  ;;  %v2326_v47 = vmul.f32 %v4673_v16, %v4813_v27  ;;  %v2378_v24 = vmul.f32 %v4687_v62, %v4817_v11 }
 0x177   : > { %v2666_v39 = vpack.c.bf16 %v2652_v14, %v2651_v34  ;;  %v2553_v22 = vadd.f32 %v2537_v41, %v2500_v57  ;;  %v2289_v13 = vadd.f32 %v2273_v7, %v2236_v55  ;;  %v2379_v9 = vmul.f32 %v4687_v62, %v4821_v49 }
 0x178   : > { %v2605_v15 = vadd.f32 %v2589_v5, %v2552_v37  ;;  %v2341_v21 = vadd.f32 %v2325_v51, %v2288_v61  ;;  %v2431_v10 = vmul.f32 %v4678_v48, %v4825_v20  ;;  %v2432_v43 = vmul.f32 %v4678_v48, %v4830_v38 }
 0x179   : > { %3635 = vmatmul.mubr.bf16.vlgmr.msra.gmra.mxu0 %v2666_v39  ;;  %v2606_v35 = vadd.f32 %v2590_v63, %v2553_v22  ;;  %v2342_v2 = vadd.f32 %v2326_v47, %v2289_v13  ;;  %v2485_v4 = vmul.f32 %v4692_v0, %v4868_v31  ;;  %v2486_v3 = vmul.f32 %v4692_v0, %v4870_v46  ;;  %v4897_v63 = vld [vmem:[%s5261_s6] ss:$0 sm:$0xff]  ;;  %v4925_v22 = vld [vmem:[#allocation2 + $0x150] sm:$0xff] }
 0x17a   : > { %v2621_v42 = vmul.f32 %v4837_v52, %v2605_v15  ;;  %v2394_v59 = vadd.f32 %v2378_v24, %v2341_v21  ;;  %v2538_v18 = vmul.f32 %v4699_v6, %v4876_v40  ;;  %v2539_v26 = vmul.f32 %v4699_v6, %v4878_v25  ;;  %v4927_v21 = vld [vmem:[#allocation2 + $0x158] sm:$0xff] }
 0x17b   : > { %v2622_v41 = vmul.f32 %v4837_v52, %v2606_v35  ;;  %v2395_v5 = vadd.f32 %v2379_v9, %v2342_v2  ;;  %v2591_v12 = vmul.f32 %v4712_v50, %v4885_v60  ;;  %v2592_v30 = vmul.f32 %v4712_v50, %v4887_v17  ;;  %v4933_v35 = vld [vmem:[#allocation2 + $0x159] sm:$0xff] }
 0x17c   : > { %v2637_v53 = vadd.f32 %v4897_v63, %v2621_v42  ;;  %v2447_v56 = vadd.f32 %v2431_v10, %v2394_v59  ;;  %v2168_v36 = vmul.f32 %v4627_v33, %v4809_v45  ;;  %v2169_v8 = vmul.f32 %v4627_v33, %v4813_v27  ;;  %v4942_v59 = vld [vmem:[#allocation2 + $0x152] sm:$0xff] }
 0x17d   : > { %v2638_v29 = vadd.f32 %v4897_v63, %v2622_v41  ;;  %v2448_v28 = vadd.f32 %v2432_v43, %v2395_v5  ;;  %v2221_v1 = vmul.f32 %v4632_v32, %v4817_v11  ;;  %v2222_v58 = vmul.f32 %v4632_v32, %v4821_v49  ;;  %v4931_v43 = vld [vmem:[#allocation2 + $0x151] sm:$0xff]  ;;  %v2573_v5 = vld [vmem:[#allocation2 + $0x15a] sm:$0xff] }
 0x17e   : > { %v2653_v23 = vmax.f32 %v2637_v53, 0.0  ;;  %v2501_v34 = vadd.f32 %v2485_v4, %v2447_v56  ;;  %v2274_v19 = vmul.f32 %v4664_v44, %v4825_v20  ;;  %v2275_v45 = vmul.f32 %v4664_v44, %v4830_v38 }
 0x17f   : > { %v2654_v54 = vmax.f32 %v2638_v29, 0.0  ;;  %v2502_v7 = vadd.f32 %v2486_v3, %v2448_v28  ;;  %v2237_v27 = vadd.f32 %v2221_v1, %v2168_v36  ;;  %v2238_v14 = vadd.f32 %v2222_v58, %v2169_v8 }
 0x180   : > { %v2554_v57 = vadd.f32 %v2538_v18, %v2501_v34  ;;  %v2327_v55 = vmul.f32 %v4673_v16, %v4868_v31  ;;  %v2328_v11 = vmul.f32 %v4673_v16, %v4870_v46  ;;  %v2380_v49 = vmul.f32 %v4687_v62, %v4876_v40 }
 0x181   : > { %v2667_v51 = vpack.c.bf16 %v2654_v54, %v2653_v23  ;;  %v2555_v37 = vadd.f32 %v2539_v26, %v2502_v7  ;;  %v2290_v20 = vadd.f32 %v2274_v19, %v2237_v27  ;;  %v2291_v61 = vadd.f32 %v2275_v45, %v2238_v14 }
 0x182   : > { %v2607_v47 = vadd.f32 %v2591_v12, %v2554_v57  ;;  %v2381_v38 = vmul.f32 %v4687_v62, %v4878_v25  ;;  %v2433_v24 = vmul.f32 %v4678_v48, %v4885_v60  ;;  %v2434_v39 = vmul.f32 %v4678_v48, %v4887_v17 }
 0x183   : > { %3638 = vmatprep.mubr.bf16.mxu0 %v2667_v51  ;;  %v2608_v13 = vadd.f32 %v2592_v30, %v2555_v37  ;;  %v2343_v9 = vadd.f32 %v2327_v55, %v2290_v20  ;;  %v2344_v15 = vadd.f32 %v2328_v11, %v2291_v61  ;;  %v2487_v10 = vmul.f32 %v4692_v0, %v4925_v22  ;;  %v4973_v37 = vld [vmem:[#allocation2 + $0x168] sm:$0xff] }
 0x184   : > { %v2623_v2 = vmul.f32 %v4837_v52, %v2607_v47  ;;  %v2488_v4 = vmul.f32 %v4692_v0, %v4927_v21  ;;  %v2540_v3 = vmul.f32 %v4699_v6, %v4931_v43  ;;  %v2541_v42 = vmul.f32 %v4699_v6, %v4933_v35 }
 0x185   : > { %v2624_v18 = vmul.f32 %v4837_v52, %v2608_v13  ;;  %v2396_v26 = vadd.f32 %v2380_v49, %v2343_v9  ;;  %v2397_v41 = vadd.f32 %v2381_v38, %v2344_v15  ;;  %v2593_v12 = vmul.f32 %v4712_v50, %v4942_v59  ;;  %v4975_v38 = vld [vmem:[#allocation2 + $0x170] sm:$0xff] }
 0x186   : > { %v2639_v30 = vadd.f32 %v4897_v63, %v2623_v2  ;;  %v2594_v53 = vmul.f32 %v4712_v50, %v2573_v5  ;;  %v2170_v56 = vmul.f32 %v4627_v33, %v4868_v31  ;;  %v2171_v36 = vmul.f32 %v4627_v33, %v4870_v46  ;;  %v4981_v13 = vld [vmem:[#allocation2 + $0x171] sm:$0xff] }
 0x187   : > { %v2640_v8 = vadd.f32 %v4897_v63, %v2624_v18  ;;  %v2449_v29 = vadd.f32 %v2433_v24, %v2396_v26  ;;  %v2450_v28 = vadd.f32 %v2434_v39, %v2397_v41  ;;  %v2223_v1 = vmul.f32 %v4632_v32, %v4876_v40  ;;  %v4979_v39 = vld [vmem:[#allocation2 + $0x169] sm:$0xff]  ;;  %v4993_v26 = vld [vmem:[#allocation2 + $0x172] sm:$0xff] }
 0x188   : > { %v2655_v58 = vmax.f32 %v2639_v30, 0.0  ;;  %v2224_v23 = vmul.f32 %v4632_v32, %v4878_v25  ;;  %v2276_v34 = vmul.f32 %v4664_v44, %v4885_v60  ;;  %v2277_v31 = vmul.f32 %v4664_v44, %v4887_v17 }
 0x189   : > { %v2656_v19 = vmax.f32 %v2640_v8, 0.0  ;;  %v2503_v45 = vadd.f32 %v2487_v10, %v2449_v29  ;;  %v2504_v46 = vadd.f32 %v2488_v4, %v2450_v28  ;;  %v2239_v54 = vadd.f32 %v2223_v1, %v2170_v56  ;;  %v4989_v4 = vld [vmem:[#allocation2 + $0x16a] sm:$0xff] }
 0x18a   : > { %v2240_v7 = vadd.f32 %v2224_v23, %v2171_v36  ;;  %v2329_v27 = vmul.f32 %v4673_v16, %v4925_v22  ;;  %v2330_v40 = vmul.f32 %v4673_v16, %v4927_v21  ;;  %v2382_v25 = vmul.f32 %v4687_v62, %v4931_v43 }
 0x18b   : > { %v2668_v14 = vpack.c.bf16 %v2656_v19, %v2655_v58  ;;  %v2556_v57 = vadd.f32 %v2540_v3, %v2503_v45  ;;  %v2557_v60 = vadd.f32 %v2541_v42, %v2504_v46  ;;  %v2292_v55 = vadd.f32 %v2276_v34, %v2239_v54 }
 0x18c   : > { %v2293_v11 = vadd.f32 %v2277_v31, %v2240_v7  ;;  %v2383_v17 = vmul.f32 %v4687_v62, %v4933_v35  ;;  %v2435_v49 = vmul.f32 %v4678_v48, %v4942_v59  ;;  %v2436_v51 = vmul.f32 %v4678_v48, %v2573_v5  ;;  %v2470_v7 = vld [vmem:[#allocation2 + $0x180] sm:$0xff] }
 0x18d   : > { %3639 = vmatmul.mubr.bf16.gmra.mxu0 %v2668_v14  ;;  %v2609_v20 = vadd.f32 %v2593_v12, %v2556_v57  ;;  %v2610_v61 = vadd.f32 %v2594_v53, %v2557_v60  ;;  %v2345_v47 = vadd.f32 %v2329_v27, %v2292_v55  ;;  %v2489_v24 = vmul.f32 %v4692_v0, %v4973_v37 }
 0x18e   : > { %v2346_v9 = vadd.f32 %v2330_v40, %v2293_v11  ;;  %v2490_v15 = vmul.f32 %v4692_v0, %v4975_v38  ;;  %v2542_v10 = vmul.f32 %v4699_v6, %v4979_v39  ;;  %v2543_v2 = vmul.f32 %v4699_v6, %v4981_v13  ;;  %v2524_v11 = vld [vmem:[#allocation2 + $0x189] sm:$0xff] }
 0x18f   : > { %v2625_v3 = vmul.f32 %v4837_v52, %v2609_v20  ;;  %v2626_v42 = vmul.f32 %v4837_v52, %v2610_v61  ;;  %v2398_v18 = vadd.f32 %v2382_v25, %v2345_v47  ;;  %v2595_v41 = vmul.f32 %v4712_v50, %v4989_v4  ;;  %v2523_v25 = vld [vmem:[#allocation2 + $0x181] sm:$0xff]  ;;  %v2577_v47 = vld [vmem:[#allocation2 + $0x18a] sm:$0xff] }
 0x190   : > { %v2399_v12 = vadd.f32 %v2383_v17, %v2346_v9  ;;  %v2596_v30 = vmul.f32 %v4712_v50, %v4993_v26  ;;  %v2172_v53 = vmul.f32 %v4627_v33, %v4925_v22  ;;  %v2173_v56 = vmul.f32 %v4627_v33, %v4927_v21  ;;  %v2576_v17 = vld [vmem:[#allocation2 + $0x182] sm:$0xff] }
 0x191   : > { %v2641_v36 = vadd.f32 %v4897_v63, %v2625_v3  ;;  %v2642_v8 = vadd.f32 %v4897_v63, %v2626_v42  ;;  %v2451_v29 = vadd.f32 %v2435_v49, %v2398_v18  ;;  %v2225_v28 = vmul.f32 %v4632_v32, %v4931_v43 }
 0x192   : > { %v2452_v1 = vadd.f32 %v2436_v51, %v2399_v12  ;;  %v2226_v58 = vmul.f32 %v4632_v32, %v4933_v35  ;;  %v2278_v23 = vmul.f32 %v4664_v44, %v4942_v59  ;;  %v2279_v22 = vmul.f32 %v4664_v44, %v2573_v5  ;;  %v2471_v5 = vld [vmem:[#allocation2 + $0x188] sm:$0xff] }
 0x193   : > { %v2657_v34 = vmax.f32 %v2641_v36, 0.0  ;;  %v2658_v31 = vmax.f32 %v2642_v8, 0.0  ;;  %v2505_v21 = vadd.f32 %v2489_v24, %v2451_v29  ;;  %v2241_v19 = vadd.f32 %v2225_v28, %v2172_v53 }
 0x194   : > { %v2506_v45 = vadd.f32 %v2490_v15, %v2452_v1  ;;  %v2242_v46 = vadd.f32 %v2226_v58, %v2173_v56  ;;  %v2331_v54 = vmul.f32 %v4673_v16, %v4973_v37  ;;  %v2332_v43 = vmul.f32 %v4673_v16, %v4975_v38 }
 0x195   : > { %v2669_v27 = vpack.c.bf16 %v2658_v31, %v2657_v34  ;;  %v2558_v35 = vadd.f32 %v2542_v10, %v2505_v21  ;;  %v2294_v40 = vadd.f32 %v2278_v23, %v2241_v19  ;;  %v2384_v59 = vmul.f32 %v4687_v62, %v4979_v39 }
 0x196   : > { %v2559_v14 = vadd.f32 %v2543_v2, %v2506_v45  ;;  %v2295_v57 = vadd.f32 %v2279_v22, %v2242_v46  ;;  %v2385_v60 = vmul.f32 %v4687_v62, %v4981_v13  ;;  %v2437_v55 = vmul.f32 %v4678_v48, %v4989_v4 }
 0x197   : > { %3642 = vmatprep.mubr.bf16.mxu0 %v2669_v27  ;;  %v2611_v49 = vadd.f32 %v2595_v41, %v2558_v35  ;;  %v2347_v51 = vadd.f32 %v2331_v54, %v2294_v40  ;;  %v2438_v20 = vmul.f32 %v4678_v48, %v4993_v26  ;;  %v2491_v61 = vmul.f32 %v4692_v0, %v2470_v7  ;;  %v2472_v27 = vld [vmem:[#allocation2 + $0x198] sm:$0xff] }
 0x198   : > { %v2612_v24 = vadd.f32 %v2596_v30, %v2559_v14  ;;  %v2348_v9 = vadd.f32 %v2332_v43, %v2295_v57  ;;  %v2492_v15 = vmul.f32 %v4692_v0, %v2471_v5  ;;  %v2544_v10 = vmul.f32 %v4699_v6, %v2523_v25  ;;  %v2525_v14 = vld [vmem:[#allocation2 + $0x199] sm:$0xff]  ;;  %v2526_v57 = vld [vmem:[#allocation2 + $0x1a1] sm:$0xff] }
 0x199   : > { %v2627_v2 = vmul.f32 %v4837_v52, %v2611_v49  ;;  %v2400_v3 = vadd.f32 %v2384_v59, %v2347_v51  ;;  %v2545_v42 = vmul.f32 %v4699_v6, %v2524_v11  ;;  %v2597_v18 = vmul.f32 %v4712_v50, %v2576_v17  ;;  %v2578_v49 = vld [vmem:[#allocation2 + $0x19a] sm:$0xff] }
 0x19a   : > { %v2628_v41 = vmul.f32 %v4837_v52, %v2612_v24  ;;  %v2401_v12 = vadd.f32 %v2385_v60, %v2348_v9  ;;  %v2598_v53 = vmul.f32 %v4712_v50, %v2577_v47  ;;  %v2174_v30 = vmul.f32 %v4627_v33, %v4973_v37 }
 0x19b   : > { %v2643_v56 = vadd.f32 %v4897_v63, %v2627_v2  ;;  %v2453_v36 = vadd.f32 %v2437_v55, %v2400_v3  ;;  %v2175_v8 = vmul.f32 %v4627_v33, %v4975_v38  ;;  %v2227_v29 = vmul.f32 %v4632_v32, %v4979_v39  ;;  %v3778_v55 = vld [vmem:[#allocation2 + $0x8] sm:$0xff] }
 0x19c   : > { %v2644_v28 = vadd.f32 %v4897_v63, %v2628_v41  ;;  %v2454_v1 = vadd.f32 %v2438_v20, %v2401_v12  ;;  %v2228_v58 = vmul.f32 %v4632_v32, %v4981_v13  ;;  %v2280_v23 = vmul.f32 %v4664_v44, %v4989_v4 }
 0x19d   : > { %v2659_v22 = vmax.f32 %v2643_v56, 0.0  ;;  %v2507_v37 = vadd.f32 %v2491_v61, %v2453_v36  ;;  %v2243_v34 = vadd.f32 %v2227_v29, %v2174_v30  ;;  %v2281_v31 = vmul.f32 %v4664_v44, %v4993_v26 }
 0x19e   : > { %v2660_v21 = vmax.f32 %v2644_v28, 0.0  ;;  %v2508_v33 = vadd.f32 %v2492_v15, %v2454_v1  ;;  %v2244_v38 = vadd.f32 %v2228_v58, %v2175_v8  ;;  %v2333_v39 = vmul.f32 %v4673_v16, %v2470_v7  ;;  %v5069_v58 = vld [vmem:[%s5266_s11] ss:$0 sm:$0xff] }
 0x19f   : > { %v2560_v19 = vadd.f32 %v2544_v10, %v2507_v37  ;;  %v2296_v45 = vadd.f32 %v2280_v23, %v2243_v34  ;;  %v2334_v46 = vmul.f32 %v4673_v16, %v2471_v5  ;;  %v2386_v32 = vmul.f32 %v4687_v62, %v2523_v25  ;;  %v5085_v37 = vld [vmem:[%s5264_s9] ss:$0 sm:$0xff] }
 0x1a0   : > { %v2670_v13 = vpack.c.bf16 %v2660_v21, %v2659_v22  ;;  %v2561_v54 = vadd.f32 %v2545_v42, %v2508_v33  ;;  %v2297_v4 = vadd.f32 %v2281_v31, %v2244_v38  ;;  %v2387_v43 = vmul.f32 %v4687_v62, %v2524_v11 }
 0x1a1   : > { %v2613_v35 = vadd.f32 %v2597_v18, %v2560_v19  ;;  %v2349_v40 = vadd.f32 %v2333_v39, %v2296_v45  ;;  %v2439_v44 = vmul.f32 %v4678_v48, %v2576_v17  ;;  %v2440_v7 = vmul.f32 %v4678_v48, %v2577_v47  ;;  %v2579_v48 = vld [vmem:[#allocation2 + $0x1a2] sm:$0xff] }
 0x1a2   : > { %3643 = vmatmul.mubr.bf16.gmra.mxu0 %v2670_v13  ;;  %v2614_v26 = vadd.f32 %v2598_v53, %v2561_v54  ;;  %v2350_v59 = vadd.f32 %v2334_v46, %v2297_v4  ;;  %v2493_v25 = vmul.f32 %v4692_v0, %v2472_v27  ;;  %v2494_v11 = vmul.f32 %v3778_v55, %v4692_v0 }
 0x1a3   : > { %v2629_v16 = vmul.f32 %v4837_v52, %v2613_v35  ;;  %v2402_v5 = vadd.f32 %v2386_v32, %v2349_v40  ;;  %v2546_v20 = vmul.f32 %v4699_v6, %v2525_v14  ;;  %v2547_v24 = vmul.f32 %v4699_v6, %v2526_v57 }
 0x1a4   : > { %v2630_v60 = vmul.f32 %v4837_v52, %v2614_v26  ;;  %v2403_v62 = vadd.f32 %v2387_v43, %v2350_v59  ;;  %v2599_v10 = vmul.f32 %v4712_v50, %v2578_v49  ;;  %v2600_v0 = vmul.f32 %v4712_v50, %v2579_v48  ;;  %v3604_v50 = vpop.f32.mrf.mxu1 }
 0x1a5   : > { %v2645_v17 = vadd.f32 %v4897_v63, %v2629_v16  ;;  %v2455_v51 = vadd.f32 %v2439_v44, %v2402_v5  ;;  %v2069_v23 = vmul.f32 %v3604_v50, %v5069_v58 }
 0x1a6   : > { %v2646_v61 = vadd.f32 %v4897_v63, %v2630_v60  ;;  %v2456_v47 = vadd.f32 %v2440_v7, %v2403_v62  ;;  %v1997_v1 = vpop.f32.mrf.mxu1 }
 0x1a7   : > { %v2661_v9 = vmax.f32 %v2645_v17, 0.0  ;;  %v2509_v15 = vadd.f32 %v2493_v25, %v2455_v51  ;;  %v2067_v21 = vmul.f32 %v5069_v58, %v1997_v1 }
 0x1a8   : > { %v2662_v2 = vmax.f32 %v2646_v61, 0.0  ;;  %v2510_v3 = vadd.f32 %v2494_v11, %v2456_v47  ;;  %v3605_v22 = vpop.f32.mrf.mxu1 }
 0x1a9   : > { %v2562_v42 = vadd.f32 %v2546_v20, %v2509_v15  ;;  %v2070_v19 = vmul.f32 %v3605_v22, %v5069_v58 }
 0x1aa   : > { %v2671_v18 = vpack.c.bf16 %v2662_v2, %v2661_v9  ;;  %v2563_v41 = vadd.f32 %v2547_v24, %v2510_v3  ;;  %v2000_v38 = vpop.f32.mrf.mxu1 }
 0x1ab   : > { %v2615_v12 = vadd.f32 %v2599_v10, %v2562_v42  ;;  %v2068_v32 = vmul.f32 %v5069_v58, %v2000_v38 }
 0x1ac   : > { %3646 = vmatprep.mubr.bf16.mxu0 %v2671_v18  ;;  %v2616_v53 = vadd.f32 %v2600_v0, %v2563_v41  ;;  %v3608_v35 = vpop.f32.mrf.mxu1 }
 0x1ad   : > { %v2631_v30 = vmul.f32 %v4837_v52, %v2615_v12  ;;  %v2073_v60 = vmul.f32 %v3608_v35, %v5069_v58 }
 0x1ae   : > { %v2632_v56 = vmul.f32 %v4837_v52, %v2616_v53  ;;  %v5075_v52 = vld [vmem:[%s5267_s12] ss:$0 sm:$0xff]  ;;  %v2013_v25 = vpop.f32.mrf.mxu1 }
 0x1af   : > { %v2647_v6 = vadd.f32 %v4897_v63, %v2631_v30  ;;  %v2092_v31 = vadd.f32 %v5075_v52, %v2069_v23  ;;  %v2090_v54 = vadd.f32 %v5075_v52, %v2067_v21  ;;  %v2093_v44 = vadd.f32 %v5075_v52, %v2070_v19 }
 0x1b0   : > { %v2648_v36 = vadd.f32 %v4897_v63, %v2632_v56  ;;  %v5080_v63 = vld [vmem:[%s5263_s8] ss:$0 sm:$0xff]  ;;  %v2091_v14 = vadd.f32 %v5075_v52, %v2068_v32  ;;  %v3609_v62 = vpop.f32.mrf.mxu1  ;;  %v2096_v11 = vadd.f32 %v5075_v52, %v2073_v60  ;;  %v2071_v49 = vmul.f32 %v5069_v58, %v2013_v25 }
 0x1b1   : > { %v2663_v8 = vmax.f32 %v2647_v6, 0.0  ;;  %v2074_v48 = vmul.f32 %v3609_v62, %v5069_v58 }
 0x1b2   : > { %v2664_v29 = vmax.f32 %v2648_v36, 0.0  ;;  %v2016_v51 = vpop.f32.mrf.mxu1  ;;  %v2094_v15 = vadd.f32 %v5075_v52, %v2071_v49 }
 0x1b3   : > { %v2072_v24 = vmul.f32 %v5069_v58, %v2016_v51  ;;  %v2097_v42 = vadd.f32 %v5075_v52, %v2074_v48 }
 0x1b4   : > { %v2672_v28 = vpack.c.bf16 %v2664_v29, %v2663_v8  ;;  %v3612_v36 = vpop.f32.mrf.mxu1 }
 0x1b5   : > { %v2095_v53 = vadd.f32 %v5075_v52, %v2072_v24  ;;  %v2077_v29 = vmul.f32 %v3612_v36, %v5069_v58 }
 0x1b6   : > { %3647 = vmatmul.mubr.bf16.gmra.mxu0 %v2672_v28  ;;  %v2029_v8 = vpop.f32.mrf.mxu1 }
 0x1b7   : > { %v2100_v1 = vadd.f32 %v5075_v52, %v2077_v29  ;;  %v2075_v23 = vmul.f32 %v5069_v58, %v2029_v8 }
 0x1b8   : > { %v3613_v28 = vpop.f32.mrf.mxu1 }
 0x1b9   : > { %v2078_v21 = vmul.f32 %v3613_v28, %v5069_v58 }
 0x1e8   : > { %v3572_v34 = vpop.f32.mrf.mxu0 }
 0x1e9   : > { %v1799_v33 = vmul.f32 %v3572_v34, %v5080_v63  ;;  %v2032_v34 = vpop.f32.mrf.mxu1 }
 0x1ea   : > { %v1728_v39 = vpop.f32.mrf.mxu0 }
 0x1eb   : > { %v1821_v45 = vadd.f32 %v5085_v37, %v1799_v33  ;;  %v1797_v46 = vmul.f32 %v5080_v63, %v1728_v39  ;;  %v2076_v39 = vmul.f32 %v5069_v58, %v2032_v34 }
 0x1ec   : > { %v3573_v13 = vpop.f32.mrf.mxu0 }
 0x1ed   : > { %v2108_v4 = vadd.f32 %v2092_v31, %v1821_v45  ;;  %v1819_v43 = vadd.f32 %v5085_v37, %v1797_v46  ;;  %v1800_v27 = vmul.f32 %v3573_v13, %v5080_v63  ;;  %v2098_v45 = vadd.f32 %v5075_v52, %v2075_v23 }
 0x1ee   : > { %v1731_v40 = vpop.f32.mrf.mxu0 }
 0x1ef   : > { %2124 = vst [vmem:[%s5097_s20 + $0x10] sm:$0xff] %v2108_v4  ;;  %v2106_v26 = vadd.f32 %v2090_v54, %v1819_v43  ;;  %v1822_v59 = vadd.f32 %v5085_v37, %v1800_v27  ;;  %v1798_v7 = vmul.f32 %v5080_v63, %v1731_v40  ;;  %v2101_v4 = vadd.f32 %v5075_v52, %v2078_v21 }
 0x1f0   : > { %v2099_v40 = vadd.f32 %v5075_v52, %v2076_v39 }
 0x1f1   : > { %2122 = vst [vmem:[%s5097_s20] sm:$0xff] %v2106_v26  ;;  %v2109_v16 = vadd.f32 %v2093_v44, %v1822_v59  ;;  %v1820_v5 = vadd.f32 %v5085_v37, %v1798_v7  ;;  %v3616_v59 = vpop.f32.mrf.mxu1 }
 0x1f3   : > { %2125 = vst [vmem:[%s5097_s20 + $0x18] sm:$0xff] %v2109_v16  ;;  %v2107_v57 = vadd.f32 %v2091_v14, %v1820_v5  ;;  %v2045_v14 = vpop.f32.mrf.mxu1  ;;  %v2081_v16 = vmul.f32 %v3616_v59, %v5069_v58 }
 0x1f4   : > { %v2079_v25 = vmul.f32 %v5069_v58, %v2045_v14 }
 0x1f5   : > { %2123 = vst [vmem:[%s5097_s20 + $0x8] sm:$0xff] %v2107_v57  ;;  %v3617_v5 = vpop.f32.mrf.mxu1  ;;  %v2104_v60 = vadd.f32 %v5075_v52, %v2081_v16 }
 0x1f6   : > { %v2082_v49 = vmul.f32 %v3617_v5, %v5069_v58 }
 0x1f9   : > { %v3576_v55 = vpop.f32.mrf.mxu0 }
 0x1fa   : > { %v1803_v17 = vmul.f32 %v3576_v55, %v5080_v63  ;;  %v2048_v55 = vpop.f32.mrf.mxu1 }
 0x1fb   : > { %v1744_v20 = vpop.f32.mrf.mxu0 }
 0x1fc   : > { %v1825_v61 = vadd.f32 %v5085_v37, %v1803_v17  ;;  %v1801_v47 = vmul.f32 %v5080_v63, %v1744_v20  ;;  %v2102_v20 = vadd.f32 %v5075_v52, %v2079_v25 }
 0x1fd   : > { %v3577_v9 = vpop.f32.mrf.mxu0 }
 0x1fe   : > { %v2112_v10 = vadd.f32 %v2096_v11, %v1825_v61  ;;  %v1823_v2 = vadd.f32 %v5085_v37, %v1801_v47  ;;  %v1804_v3 = vmul.f32 %v3577_v9, %v5080_v63  ;;  %v2080_v47 = vmul.f32 %v5069_v58, %v2048_v55 }
 0x1ff   : > { %v1747_v0 = vpop.f32.mrf.mxu0 }
 0x200   : > { %2128 = vst [vmem:[%s5097_s20 + $0x30] sm:$0xff] %v2112_v10  ;;  %v2110_v18 = vadd.f32 %v2094_v15, %v1823_v2  ;;  %v1826_v41 = vadd.f32 %v5085_v37, %v1804_v3  ;;  %v1802_v12 = vmul.f32 %v5080_v63, %v1747_v0  ;;  %v2105_v10 = vadd.f32 %v5075_v52, %v2082_v49 }
 0x202   : > { %2126 = vst [vmem:[%s5097_s20 + $0x20] sm:$0xff] %v2110_v18  ;;  %v2113_v30 = vadd.f32 %v2097_v42, %v1826_v41  ;;  %v1824_v56 = vadd.f32 %v5085_v37, %v1802_v12  ;;  %v2103_v42 = vadd.f32 %v5075_v52, %v2080_v47  ;;  %v3668_v12 = vpop.f32.mrf.mxu1 }
 0x204   : > { %2129 = vst [vmem:[%s5097_s20 + $0x38] sm:$0xff] %v2113_v30  ;;  %v2111_v6 = vadd.f32 %v2095_v53, %v1824_v56  ;;  %v3028_v30 = vpop.f32.mrf.mxu1  ;;  %v3100_v56 = vmul.f32 %v3668_v12, %v5069_v58 }
 0x205   : > { %v3098_v36 = vmul.f32 %v5069_v58, %v3028_v30 }
 0x206   : > { %2127 = vst [vmem:[%s5097_s20 + $0x28] sm:$0xff] %v2111_v6  ;;  %v3669_v6 = vpop.f32.mrf.mxu1  ;;  %v3123_v29 = vadd.f32 %v5075_v52, %v3100_v56 }
 0x207   : > { %v3101_v23 = vmul.f32 %v3669_v6, %v5069_v58 }
 0x210   : > { %v3580_v50 = vpop.f32.mrf.mxu0 }
 0x211   : > { %v1807_v22 = vmul.f32 %v3580_v50, %v5080_v63  ;;  %v3031_v50 = vpop.f32.mrf.mxu1 }
 0x212   : > { %v1760_v31 = vpop.f32.mrf.mxu0 }
 0x213   : > { %v1829_v33 = vadd.f32 %v5085_v37, %v1807_v22  ;;  %v1805_v38 = vmul.f32 %v5080_v63, %v1760_v31  ;;  %v3121_v31 = vadd.f32 %v5075_v52, %v3098_v36 }
 0x214   : > { %v3581_v19 = vpop.f32.mrf.mxu0 }
 0x215   : > { %v2116_v46 = vadd.f32 %v2100_v1, %v1829_v33  ;;  %v1827_v32 = vadd.f32 %v5085_v37, %v1805_v38  ;;  %v1808_v13 = vmul.f32 %v3581_v19, %v5080_v63  ;;  %v3099_v38 = vmul.f32 %v5069_v58, %v3031_v50 }
 0x216   : > { %v1763_v54 = vpop.f32.mrf.mxu0 }
 0x217   : > { %2132 = vst [vmem:[%s5097_s20 + $0x50] sm:$0xff] %v2116_v46  ;;  %v2114_v43 = vadd.f32 %v2098_v45, %v1827_v32  ;;  %v1830_v27 = vadd.f32 %v5085_v37, %v1808_v13  ;;  %v1806_v35 = vmul.f32 %v5080_v63, %v1763_v54  ;;  %v3124_v46 = vadd.f32 %v5075_v52, %v3101_v23 }
 0x219   : > { %2130 = vst [vmem:[%s5097_s20 + $0x40] sm:$0xff] %v2114_v43  ;;  %v2117_v44 = vadd.f32 %v2101_v4, %v1830_v27  ;;  %v1828_v26 = vadd.f32 %v5085_v37, %v1806_v35  ;;  %v3122_v4 = vadd.f32 %v5075_v52, %v3099_v38  ;;  %v3672_v35 = vpop.f32.mrf.mxu1 }
 0x21b   : > { %2133 = vst [vmem:[%s5097_s20 + $0x58] sm:$0xff] %v2117_v44  ;;  %v2115_v7 = vadd.f32 %v2099_v40, %v1828_v26  ;;  %v3044_v44 = vpop.f32.mrf.mxu1  ;;  %v3104_v26 = vmul.f32 %v3672_v35, %v5069_v58 }
 0x21d   : > { %2131 = vst [vmem:[%s5097_s20 + $0x48] sm:$0xff] %v2115_v7  ;;  %v3673_v59 = vpop.f32.mrf.mxu1  ;;  %v3102_v7 = vmul.f32 %v5069_v58, %v3044_v44  ;;  %v3127_v16 = vadd.f32 %v5075_v52, %v3104_v26 }
 0x21f   : > { %v3047_v25 = vpop.f32.mrf.mxu1 }
 0x224   : > { %v3584_v57 = vpop.f32.mrf.mxu0 }
 0x225   : > { %v1811_v62 = vmul.f32 %v3584_v57, %v5080_v63 }
 0x226   : > { %v1776_v11 = vpop.f32.mrf.mxu0 }
 0x227   : > { %v1833_v17 = vadd.f32 %v5085_v37, %v1811_v62  ;;  %v1809_v51 = vmul.f32 %v5080_v63, %v1776_v11  ;;  %v3125_v11 = vadd.f32 %v5075_v52, %v3102_v7 }
 0x228   : > { %v3585_v48 = vpop.f32.mrf.mxu0 }
 0x229   : > { %v2120_v61 = vadd.f32 %v2104_v60, %v1833_v17  ;;  %v1831_v24 = vadd.f32 %v5085_v37, %v1809_v51  ;;  %v1812_v9 = vmul.f32 %v3585_v48, %v5080_v63  ;;  %v3105_v60 = vmul.f32 %v3673_v59, %v5069_v58 }
 0x22a   : > { %v1779_v15 = vpop.f32.mrf.mxu0  ;;  %v3103_v51 = vmul.f32 %v5069_v58, %v3047_v25 }
 0x22b   : > { %2136 = vst [vmem:[%s5097_s20 + $0x70] sm:$0xff] %v2120_v61  ;;  %v2118_v2 = vadd.f32 %v2102_v20, %v1831_v24  ;;  %v1834_v3 = vadd.f32 %v5085_v37, %v1812_v9  ;;  %v1810_v0 = vmul.f32 %v5080_v63, %v1779_v15  ;;  %v3128_v47 = vadd.f32 %v5075_v52, %v3105_v60 }
 0x22d   : > { %2134 = vst [vmem:[%s5097_s20 + $0x60] sm:$0xff] %v2118_v2  ;;  %v2121_v18 = vadd.f32 %v2105_v10, %v1834_v3  ;;  %v1832_v41 = vadd.f32 %v5085_v37, %v1810_v0  ;;  %v3126_v10 = vadd.f32 %v5075_v52, %v3103_v51  ;;  %v3676_v0 = vpop.f32.mrf.mxu1 }
 0x22f   : > { %2137 = vst [vmem:[%s5097_s20 + $0x78] sm:$0xff] %v2121_v18  ;;  %v2119_v53 = vadd.f32 %v2103_v42, %v1832_v41  ;;  %v3060_v18 = vpop.f32.mrf.mxu1  ;;  %v3108_v41 = vmul.f32 %v3676_v0, %v5069_v58 }
 0x231   : > { %2135 = vst [vmem:[%s5097_s20 + $0x68] sm:$0xff] %v2119_v53  ;;  %v3677_v12 = vpop.f32.mrf.mxu1  ;;  %v3106_v53 = vmul.f32 %v5069_v58, %v3060_v18  ;;  %v3131_v56 = vadd.f32 %v5075_v52, %v3108_v41 }
 0x233   : > { %v3063_v36 = vpop.f32.mrf.mxu1 }
 0x239   : > { %v3636_v8 = vpop.f32.mrf.mxu0 }
 0x23a   : > { %v2836_v28 = vmul.f32 %v3636_v8, %v5080_v63 }
 0x23b   : > { %v2771_v1 = vpop.f32.mrf.mxu0 }
 0x23c   : > { %v2852_v22 = vadd.f32 %v5085_v37, %v2836_v28  ;;  %v2834_v34 = vmul.f32 %v5080_v63, %v2771_v1  ;;  %v3129_v1 = vadd.f32 %v5075_v52, %v3106_v53 }
 0x23d   : > { %v3637_v21 = vpop.f32.mrf.mxu0 }
 0x23e   : > { %v3139_v33 = vadd.f32 %v3123_v29, %v2852_v22  ;;  %v2850_v39 = vadd.f32 %v5085_v37, %v2834_v34  ;;  %v2837_v19 = vmul.f32 %v3637_v21, %v5080_v63  ;;  %v3109_v29 = vmul.f32 %v3677_v12, %v5069_v58 }
 0x23f   : > { %v2774_v45 = vpop.f32.mrf.mxu0  ;;  %v3107_v34 = vmul.f32 %v5069_v58, %v3063_v36 }
 0x240   : > { %3376 = vst [vmem:[%s5097_s20 + $0x90] sm:$0xff] %v3139_v33  ;;  %v3137_v32 = vadd.f32 %v3121_v31, %v2850_v39  ;;  %v2853_v13 = vadd.f32 %v5085_v37, %v2837_v19  ;;  %v2835_v54 = vmul.f32 %v5080_v63, %v2774_v45  ;;  %v3132_v38 = vadd.f32 %v5075_v52, %v3109_v29 }
 0x242   : > { %3374 = vst [vmem:[%s5097_s20 + $0x80] sm:$0xff] %v3137_v32  ;;  %v3140_v43 = vadd.f32 %v3124_v46, %v2853_v13  ;;  %v2851_v27 = vadd.f32 %v5085_v37, %v2835_v54  ;;  %v3130_v46 = vadd.f32 %v5075_v52, %v3107_v34  ;;  %v3680_v54 = vpop.f32.mrf.mxu1 }
 0x244   : > { %3377 = vst [vmem:[%s5097_s20 + $0x98] sm:$0xff] %v3140_v43  ;;  %v3138_v40 = vadd.f32 %v3122_v4, %v2851_v27  ;;  %v3076_v43 = vpop.f32.mrf.mxu1  ;;  %v3112_v27 = vmul.f32 %v3680_v54, %v5069_v58 }
 0x246   : > { %3375 = vst [vmem:[%s5097_s20 + $0x88] sm:$0xff] %v3138_v40  ;;  %v3681_v35 = vpop.f32.mrf.mxu1  ;;  %v3110_v40 = vmul.f32 %v5069_v58, %v3076_v43  ;;  %v3135_v26 = vadd.f32 %v5075_v52, %v3112_v27 }
 0x248   : > { %v3079_v7 = vpop.f32.mrf.mxu1 }
 0x24d   : > { %v3640_v14 = vpop.f32.mrf.mxu0 }
 0x24e   : > { %v2840_v5 = vmul.f32 %v3640_v14, %v5080_v63 }
 0x24f   : > { %v2787_v57 = vpop.f32.mrf.mxu0 }
 0x250   : > { %v2856_v62 = vadd.f32 %v5085_v37, %v2840_v5  ;;  %v2838_v55 = vmul.f32 %v5080_v63, %v2787_v57  ;;  %v3133_v57 = vadd.f32 %v5075_v52, %v3110_v40 }
 0x251   : > { %v3641_v49 = vpop.f32.mrf.mxu0 }
 0x252   : > { %v3143_v17 = vadd.f32 %v3127_v16, %v2856_v62  ;;  %v2854_v20 = vadd.f32 %v5085_v37, %v2838_v55  ;;  %v2841_v48 = vmul.f32 %v3641_v49, %v5080_v63  ;;  %v3113_v16 = vmul.f32 %v3681_v35, %v5069_v58 }
 0x253   : > { %v2790_v61 = vpop.f32.mrf.mxu0  ;;  %v3111_v55 = vmul.f32 %v5069_v58, %v3079_v7 }
 0x254   : > { %3380 = vst [vmem:[%s5097_s20 + $0xb0] sm:$0xff] %v3143_v17  ;;  %v3141_v24 = vadd.f32 %v3125_v11, %v2854_v20  ;;  %v2857_v9 = vadd.f32 %v5085_v37, %v2841_v48  ;;  %v2839_v15 = vmul.f32 %v5080_v63, %v2790_v61  ;;  %v3136_v51 = vadd.f32 %v5075_v52, %v3113_v16 }
 0x256   : > { %3378 = vst [vmem:[%s5097_s20 + $0xa0] sm:$0xff] %v3141_v24  ;;  %v3144_v2 = vadd.f32 %v3128_v47, %v2857_v9  ;;  %v2855_v3 = vadd.f32 %v5085_v37, %v2839_v15  ;;  %v3134_v47 = vadd.f32 %v5075_v52, %v3111_v55 }
 0x258   : > { %3381 = vst [vmem:[%s5097_s20 + $0xb8] sm:$0xff] %v3144_v2  ;;  %v3142_v42 = vadd.f32 %v3126_v10, %v2855_v3 }
 0x25a   : > { %3379 = vst [vmem:[%s5097_s20 + $0xa8] sm:$0xff] %v3142_v42 }
 0x262   : > { %v3644_v30 = vpop.f32.mrf.mxu0 }
 0x263   : > { %v2844_v6 = vmul.f32 %v3644_v30, %v5080_v63 }
 0x264   : > { %v2803_v8 = vpop.f32.mrf.mxu0 }
 0x265   : > { %v2860_v28 = vadd.f32 %v5085_v37, %v2844_v6  ;;  %v2842_v50 = vmul.f32 %v5080_v63, %v2803_v8 }
 0x266   : > { %v3645_v23 = vpop.f32.mrf.mxu0 }
 0x267   : > { %v3147_v22 = vadd.f32 %v3131_v56, %v2860_v28  ;;  %v2858_v31 = vadd.f32 %v5085_v37, %v2842_v50  ;;  %v2845_v21 = vmul.f32 %v3645_v23, %v5080_v63 }
 0x268   : > { %v2806_v33 = vpop.f32.mrf.mxu0 }
 0x269   : > { %3384 = vst [vmem:[%s5097_s20 + $0xd0] sm:$0xff] %v3147_v22  ;;  %v3145_v39 = vadd.f32 %v3129_v1, %v2858_v31  ;;  %v2861_v19 = vadd.f32 %v5085_v37, %v2845_v21  ;;  %v2843_v45 = vmul.f32 %v5080_v63, %v2806_v33 }
 0x26b   : > { %3382 = vst [vmem:[%s5097_s20 + $0xc0] sm:$0xff] %v3145_v39  ;;  %v3148_v32 = vadd.f32 %v3132_v38, %v2861_v19  ;;  %v2859_v13 = vadd.f32 %v5085_v37, %v2843_v45 }
 0x26d   : > { %3385 = vst [vmem:[%s5097_s20 + $0xd8] sm:$0xff] %v3148_v32  ;;  %v3146_v4 = vadd.f32 %v3130_v46, %v2859_v13 }
 0x26f   : > { %3383 = vst [vmem:[%s5097_s20 + $0xc8] sm:$0xff] %v3146_v4 }
 0x276   : > { %v3648_v44 = vpop.f32.mrf.mxu0 }
 0x277   : > { %v2848_v59 = vmul.f32 %v3648_v44, %v5080_v63 }
 0x278   : > { %v2819_v14 = vpop.f32.mrf.mxu0 }
 0x279   : > { %v2864_v5 = vadd.f32 %v5085_v37, %v2848_v59  ;;  %v2846_v25 = vmul.f32 %v5080_v63, %v2819_v14 }
 0x27a   : > { %v3649_v60 = vpop.f32.mrf.mxu0 }
 0x27b   : > { %v3151_v62 = vadd.f32 %v3135_v26, %v2864_v5  ;;  %v2862_v11 = vadd.f32 %v5085_v37, %v2846_v25  ;;  %v2849_v49 = vmul.f32 %v3649_v60, %v5080_v63 }
 0x27c   : > { %v2822_v17 = vpop.f32.mrf.mxu0 }
 0x27d   : > { %3388 = vst [vmem:[%s5097_s20 + $0xf0] sm:$0xff] %v3151_v62  ;;  %v3149_v20 = vadd.f32 %v3133_v57, %v2862_v11  ;;  %v2865_v48 = vadd.f32 %v5085_v37, %v2849_v49  ;;  %v2847_v61 = vmul.f32 %v5080_v63, %v2822_v17 }
 0x27f   : > { %3386 = vst [vmem:[%s5097_s20 + $0xe0] sm:$0xff] %v3149_v20  ;;  %v3152_v24 = vadd.f32 %v3136_v51, %v2865_v48  ;;  %v2863_v9 = vadd.f32 %v5085_v37, %v2847_v61 }
 0x281   : > { %3389 = vst [vmem:[%s5097_s20 + $0xf8] sm:$0xff] %v3152_v24  ;;  %v3150_v58 = vadd.f32 %v3134_v47, %v2863_v9 }
 0x283   : > { %3387 = vst [vmem:[%s5097_s20 + $0xe8] sm:$0xff] %v3150_v58 }
 0x284 PF: > { %s23_s25 = sadd.s32 1, %s3785_s25  }
 0x285   : > { %p20_p4 = scmp.ge.s32.totalorder %s23_s25, 4  }
 0x287   :  { %22 = sbr.rel (!%p20_p4) target bundleno = 1 (0x1), region = 110 }

</bundles_post_ra>
